<compile_context>
chip_gen: v5e
topology: v5e:2x2
jax: 0.10.0
libtpu: 0.0.40
codegen_flags: <defaults>
</compile_context>

<pallas_src>
import functools

import jax
import jax.numpy as jnp
from jax import lax
from jax.experimental import pallas as pl
from jax.experimental.pallas import tpu as pltpu


# --------------------------------------------------------------------------
# Generation-aware compiler params / tiling helpers
# --------------------------------------------------------------------------
def _vmem_limit_bytes():
    cap = 64 * 1024 * 1024          # safe fallback (v7x per-core VMEM)
    try:
        info = pltpu.get_tpu_info()
        cap = int(getattr(info, "vmem_capacity_bytes", cap))
    except Exception:
        pass
    return int(min(max(cap * 7 // 10, 32 * 1024 * 1024), 96 * 1024 * 1024))


def _cparams(*sem):
    return pltpu.CompilerParams(dimension_semantics=sem,
                                vmem_limit_bytes=_vmem_limit_bytes())


def _balanced(total, target, quantum=8):
    """Balanced block size <= ~target; multiple of `quantum` unless full."""
    blk = max(1, min(total, target))
    nblk = pl.cdiv(total, blk)
    blk = pl.cdiv(total, nblk)
    if blk < total:
        blk = min(total, ((blk + quantum - 1) // quantum) * quantum)
    return blk, pl.cdiv(total, blk)


# --------------------------------------------------------------------------
# Kernel 1 & 3: 3x3 "valid" conv, stride 1 or 2 along rows, dense columns.
#   Output row i uses input rows stride*i + {0,1,2}; the 9 taps are merged
#   into ONE (Cout, 9*Cin) @ (9*Cin, Wo) MXU matmul per output row.
# --------------------------------------------------------------------------
def _conv3x3_rows_kernel(x_ref, w_ref, b_ref, o_ref, *, stride, ho_total, tro):
    r = pl.program_id(1)
    row0 = r * tro
    wm = w_ref[...]                      # (Cout, 9*Cin)
    bias = b_ref[...]                    # (Cout, 1)
    wo = o_ref.shape[3]                  # Wi - 2 (dense columns)
    n_valid = jnp.minimum(tro, ho_total - row0)

    def body(i, carry):
        base = stride * (row0 + i)
        rows = [x_ref[0, :, base + kh, :] for kh in range(3)]       # (Cin, Wi)
        taps = [rows[kh][:, kw:kw + wo] for kh in range(3) for kw in range(3)]
        stacked = jnp.concatenate(taps, axis=0)                     # (9*Cin, wo)
        acc = jnp.dot(wm, stacked, preferred_element_type=jnp.float32) + bias
        o_ref[0, :, i, :] = acc
        return carry

    lax.fori_loop(0, n_valid, body, 0)


def conv3x3_rows(x, w_flat, bias_col, *, stride, ho, row_block_bytes=2 << 20):
    """x: (N, Cin, Hi, Wi);  w_flat: (Cout, 9*Cin) tap-major;  bias: (Cout, 1).
    Returns (N, Cout, ho, Wi-2): rows are the stride-subsampled outputs, the
    column axis is the dense stride-1 result (caller picks the columns)."""
    n, cin, hi, wi = x.shape
    cout = w_flat.shape[0]
    wo = wi - 2
    tro, nrb = _balanced(ho, max(1, row_block_bytes // max(cout * wo * 4, 1)))
    kern = functools.partial(_conv3x3_rows_kernel, stride=stride,
                             ho_total=ho, tro=tro)
    return pl.pallas_call(
        kern,
        out_shape=jax.ShapeDtypeStruct((n, cout, ho, wo), jnp.float32),
        grid=(n, nrb),
        in_specs=[
            pl.BlockSpec((1, cin, hi, wi), lambda b, r: (b, 0, 0, 0)),
            pl.BlockSpec((cout, 9 * cin), lambda b, r: (0, 0)),
            pl.BlockSpec((cout, 1), lambda b, r: (0, 0)),
        ],
        out_specs=pl.BlockSpec((1, cout, tro, wo), lambda b, r: (b, 0, r, 0)),
        compiler_params=_cparams("parallel", "parallel"),
    )(x, w_flat, bias_col)


# --------------------------------------------------------------------------
# Kernel 2: max_pool2d(kernel=7, stride=3) evaluated only at stride-3 output
#           rows, with the column stride-2 pick of the preceding conv folded
#           into the column taps:  out[ip, q] = max_{t,s} in[3*ip+t, q+2*s].
#           Caller takes the cheap ::6 column pick of the small result.
# --------------------------------------------------------------------------
def _maxpool7s3_rows_kernel(x_ref, o_ref):
    hp = o_ref.shape[2]
    wo = o_ref.shape[3]

    def body(ip, carry):
        r0 = 3 * ip
        rmax = x_ref[0, :, r0, :]
        for t in range(1, 7):                                   # 7 row taps
            rmax = jnp.maximum(rmax, x_ref[0, :, r0 + t, :])
        cmax = rmax[:, 0:wo]
        for s in range(1, 7):                                   # 7 col taps, step 2
            cmax = jnp.maximum(cmax, rmax[:, 2 * s:2 * s + wo])
        o_ref[0, :, ip, :] = cmax
        return carry

    lax.fori_loop(0, hp, body, 0)


def maxpool7s3_rows(x_dense, *, hp):
    n, c, hc, wd = x_dense.shape
    wo = wd - 12
    return pl.pallas_call(
        _maxpool7s3_rows_kernel,
        out_shape=jax.ShapeDtypeStruct((n, c, hp, wo), x_dense.dtype),
        grid=(n,),
        in_specs=[pl.BlockSpec((1, c, hc, wd), lambda b: (b, 0, 0, 0))],
        out_specs=pl.BlockSpec((1, c, hp, wo), lambda b: (b, 0, 0, 0)),
        compiler_params=_cparams("parallel"),
    )(x_dense)


# --------------------------------------------------------------------------
# Kernel 4: fused  bilinear-upsample(c3) -> conv4(c3up + conv_f(conv1(x)))
#                  -> sigmoid -> x * m ,  tiled over image rows.
#   The tiny (f, Hp, Wp) c3 block and the interpolation matrices stay
#   resident in VMEM; the upsampled tile lives only in a VMEM scratch.
# --------------------------------------------------------------------------
def _esa_tail_kernel(x_ref, c3_ref, ah_ref, awt_ref, w4_ref, wx_ref, bc_ref,
                     o_ref, up_scr, *, h_total, tr):
    r = pl.program_id(1)
    row0 = r * tr
    f = c3_ref.shape[1]
    ah = ah_ref[...]                     # (tr, Hp)  row block of Ah
    awt = awt_ref[...]                   # (Wp, W)
    w4 = w4_ref[...]                     # (n_feats, f)
    wxm = wx_ref[...]                    # (n_feats, n_feats)
    bias = bc_ref[...]                   # (n_feats, 1)

    # Phase 1: per-channel separable bilinear upsample of this row block.
    for ch in range(f):                  # f is small -> static unroll
        t1 = jnp.dot(ah, c3_ref[0, ch], preferred_element_type=jnp.float32)
        up_scr[ch] = jnp.dot(t1, awt, preferred_element_type=jnp.float32)

    n_valid = jnp.minimum(tr, h_total - row0)

    # Phase 2: per image row: gate = sigmoid(W4@up + (W4 Wf W1)@x + b); y = x*gate
    def body(t, carry):
        x_row = x_ref[0, :, t, :]        # (n_feats, W)
        up_row = up_scr[:, t, :]         # (f, W)
        c4 = (jnp.dot(w4, up_row, preferred_element_type=jnp.float32)
              + jnp.dot(wxm, x_row, preferred_element_type=jnp.float32)
              + bias)
        # numerically-stable sigmoid; exp / reciprocal go to the EUP slot.
        e = jnp.exp(-jnp.abs(c4))
        inv = pl.reciprocal(1.0 + e)     # approx=True possible if tolerance allows
        m = jnp.where(c4 >= 0.0, inv, e * inv)
        o_ref[0, :, t, :] = (x_row * m).astype(o_ref.dtype)
        return carry

    lax.fori_loop(0, n_valid, body, 0)


def esa_tail_fused(x, c3s, ah, awt, w4m, wx, bc_col, *, tile_bytes=4 << 20):
    n, nf, h, w = x.shape
    _, f, hp, wp = c3s.shape
    tr, nrb = _balanced(h, max(1, tile_bytes // max(nf * w * 4, 1)))
    kern = functools.partial(_esa_tail_kernel, h_total=h, tr=tr)
    return pl.pallas_call(
        kern,
        out_shape=jax.ShapeDtypeStruct((n, nf, h, w), jnp.float32),
        grid=(n, nrb),
        in_specs=[
            pl.BlockSpec((1, nf, tr, w), lambda b, r: (b, 0, r, 0)),
            pl.BlockSpec((1, f, hp, wp), lambda b, r: (b, 0, 0, 0)),
            pl.BlockSpec((tr, hp), lambda b, r: (r, 0)),
            pl.BlockSpec((wp, w), lambda b, r: (0, 0)),
            pl.BlockSpec((nf, f), lambda b, r: (0, 0)),
            pl.BlockSpec((nf, nf), lambda b, r: (0, 0)),
            pl.BlockSpec((nf, 1), lambda b, r: (0, 0)),
        ],
        out_specs=pl.BlockSpec((1, nf, tr, w), lambda b, r: (b, 0, r, 0)),
        scratch_shapes=[pltpu.VMEM((f, tr, w), jnp.float32)],
        compiler_params=_cparams("parallel", "parallel"),
    )(x, c3s, ah, awt, w4m, wx, bc_col)


# ------------------------------- JAX glue ----------------------------------
def _interp_matrix_1d(out_size, in_size):
    """1-D bilinear interpolation weights, PyTorch align_corners=False."""
    idx = jnp.arange(out_size, dtype=jnp.float32)
    scale = in_size / out_size
    src = jnp.maximum((idx + 0.5) * scale - 0.5, 0.0)
    i0 = jnp.clip(jnp.floor(src).astype(jnp.int32), 0, in_size - 1)
    i1 = jnp.minimum(i0 + 1, in_size - 1)
    w1 = src - i0.astype(jnp.float32)
    w0 = 1.0 - w1
    rows = jnp.arange(out_size)
    a = jnp.zeros((out_size, in_size), jnp.float32)
    a = a.at[rows, i0].add(w0)
    a = a.at[rows, i1].add(w1)
    return a


def init_params(key, n_feats, f):
    ks = jax.random.split(key, 10)

    def conv_w(k, co, ci, kh, kw):
        return 0.1 * jax.random.normal(k, (co, ci, kh, kw), jnp.float32)

    def conv_b(k, co):
        return 0.05 * jax.random.normal(k, (co,), jnp.float32)

    return dict(
        w1=conv_w(ks[0], f, n_feats, 1, 1), b1=conv_b(ks[1], f),
        wf=conv_w(ks[2], f, f, 1, 1),       bf=conv_b(ks[3], f),
        w2=conv_w(ks[4], f, f, 3, 3),       b2=conv_b(ks[5], f),
        w3=conv_w(ks[6], f, f, 3, 3),       b3=conv_b(ks[7], f),
        w4=conv_w(ks[8], n_feats, f, 1, 1), b4=conv_b(ks[9], n_feats),
    )


def esa_forward(x, params):
    n, n_feats, h, w = x.shape
    f = params["w1"].shape[0]

    w1m = params["w1"][:, :, 0, 0]                                  # (f, n_feats)
    wfm = params["wf"][:, :, 0, 0]                                  # (f, f)
    w4m = params["w4"][:, :, 0, 0]                                  # (n_feats, f)

    # conv2 o conv1 : single 3x3 stride-2 conv on x (exact weight-level fold).
    w21 = jnp.einsum("ockl,ci->oikl", params["w2"], w1m)            # (f, n_feats, 3, 3)
    b21 = jnp.einsum("ockl,c->o", params["w2"], params["b1"]) + params["b2"]
    w21_flat = jnp.transpose(w21, (0, 2, 3, 1)).reshape(f, 9 * n_feats)
    w3_flat = jnp.transpose(params["w3"], (0, 2, 3, 1)).reshape(f, 9 * f)

    # conv4 o conv_f o conv1 : one (n_feats, n_feats) matrix + bias (exact fold).
    wx = w4m @ wfm @ w1m
    bc = w4m @ (wfm @ params["b1"] + params["bf"]) + params["b4"]

    xf = x.astype(jnp.float32)

    # ---- conv2(conv1(x)): stride-2 rows in-kernel, dense columns -----------
    hc = (h - 3) // 2 + 1
    wc = (w - 3) // 2 + 1
    out1 = conv3x3_rows(xf, w21_flat, b21.reshape(f, 1), stride=2, ho=hc)
    # out1: (n, f, hc, w-2);   true c1[:, :, i, j] == out1[:, :, i, 2*j]

    # ---- max_pool2d(7, 3) with the column stride-2 pick folded in ----------
    hp = (hc - 7) // 3 + 1
    wp = (wc - 7) // 3 + 1
    pooled = maxpool7s3_rows(out1, hp=hp)                 # (n, f, hp, (w-2)-12)
    v_max = pooled[:, :, :, ::6][:, :, :, :wp]            # tiny strided pick (XLA)

    # ---- conv3 (3x3, padding 1) on the tiny pooled map ----------------------
    vpad = jnp.pad(v_max, ((0, 0), (0, 0), (1, 1), (1, 1)))
    c3s = conv3x3_rows(vpad, w3_flat, params["b3"].reshape(f, 1),
                       stride=1, ho=hp)                   # (n, f, hp, wp)

    # ---- fused bilinear upsample + conv4 + conv_f-branch + sigmoid + x*m ----
    ah = _interp_matrix_1d(h, hp)                         # (h, hp)
    awt = _interp_matrix_1d(w, wp).T                      # (wp, w)
    return esa_tail_fused(xf, c3s, ah, awt, w4m, wx, bc.reshape(n_feats, 1))


if __name__ == "__main__":
    key = jax.random.PRNGKey(0)
    kx, kp = jax.random.split(key)
    N, n_feats, H, W = 2, 16, 24, 24
    esa_channels = 8
    x = jax.random.normal(kx, (N, n_feats, H, W), jnp.float32)
    params = init_params(kp, n_feats, esa_channels)
    y = jax.jit(esa_forward)(x, params)
    jax.block_until_ready(y)
    assert y.shape == (N, n_feats, H, W)
    print("KERNEL_OK")
</pallas_src>

<mosaic_0001>
module attributes {stable_mosaic.version = 11 : i64} {
  func.func @_conv3x3_rows_kernel(%arg0: i32, %arg1: i32, %arg2: memref<1x16x24x24xf32, #tpu.memory_space<vmem>>, %arg3: memref<8x144xf32, #tpu.memory_space<vmem>>, %arg4: memref<8x1xf32, #tpu.memory_space<vmem>>, %arg5: memref<1x8x11x22xf32, #tpu.memory_space<vmem>>) attributes {dimension_semantics = [#tpu.dimension_semantics<parallel>, #tpu.dimension_semantics<parallel>], iteration_bounds = array<i64: 2, 1>, scalar_prefetch = 0 : i64, scratch_operands = 0 : i64, tpu.core_type = #tpu.core_type<tc>, window_params = [{transform_indices = @transform_0, window_bounds = array<i64: 1, 16, 24, 24>}, {pipeline_mode = #tpu.pipeline_mode<synchronous>, transform_indices = @transform_1, window_bounds = array<i64: 8, 144>}, {pipeline_mode = #tpu.pipeline_mode<synchronous>, transform_indices = @transform_2, window_bounds = array<i64: 8, 1>}, {transform_indices = @transform_3, window_bounds = array<i64: 1, 8, 11, 22>}]} {
    %c11_i32 = arith.constant 11 : i32
    %0 = arith.muli %arg1, %c11_i32 : i32
    %c0 = arith.constant 0 : index
    %c0_0 = arith.constant 0 : index
    %1 = vector.load %arg3[%c0, %c0_0] : memref<8x144xf32, #tpu.memory_space<vmem>>, vector<8x144xf32>
    %c0_1 = arith.constant 0 : index
    %c0_2 = arith.constant 0 : index
    %2 = vector.load %arg4[%c0_1, %c0_2] : memref<8x1xf32, #tpu.memory_space<vmem>>, vector<8x1xf32>
    %c11_i32_3 = arith.constant 11 : i32
    %3 = arith.subi %c11_i32_3, %0 : i32
    %c11_i32_4 = arith.constant 11 : i32
    %4 = arith.minsi %c11_i32_4, %3 : i32
    %c0_i32 = arith.constant 0 : i32
    %c0_i32_5 = arith.constant 0 : i32
    %5 = arith.subi %4, %c0_i32_5 : i32
    %6 = arith.addi %c0_i32_5, %5 : i32
    %c1_i32 = arith.constant 1 : i32
    scf.for %arg6 = %c0_i32_5 to %6 step %c1_i32  : i32 {
      %7 = arith.addi %0, %arg6 : i32
      %c2_i32 = arith.constant 2 : i32
      %8 = arith.muli %c2_i32, %7 : i32
      %c0_i32_6 = arith.constant 0 : i32
      %9 = arith.addi %8, %c0_i32_6 : i32
      %c0_7 = arith.constant 0 : index
      %c0_8 = arith.constant 0 : index
      %10 = arith.index_cast %9 : i32 to index
      %c0_9 = arith.constant 0 : index
      %11 = vector.load %arg2[%c0_7, %c0_8, %10, %c0_9] : memref<1x16x24x24xf32, #tpu.memory_space<vmem>>, vector<1x16x1x24xf32>
      %12 = vector.shape_cast %11 : vector<1x16x1x24xf32> to vector<16x24xf32>
      %c1_i32_10 = arith.constant 1 : i32
      %13 = arith.addi %8, %c1_i32_10 : i32
      %c0_11 = arith.constant 0 : index
      %c0_12 = arith.constant 0 : index
      %14 = arith.index_cast %13 : i32 to index
      %c0_13 = arith.constant 0 : index
      %15 = vector.load %arg2[%c0_11, %c0_12, %14, %c0_13] : memref<1x16x24x24xf32, #tpu.memory_space<vmem>>, vector<1x16x1x24xf32>
      %16 = vector.shape_cast %15 : vector<1x16x1x24xf32> to vector<16x24xf32>
      %c2_i32_14 = arith.constant 2 : i32
      %17 = arith.addi %8, %c2_i32_14 : i32
      %c0_15 = arith.constant 0 : index
      %c0_16 = arith.constant 0 : index
      %18 = arith.index_cast %17 : i32 to index
      %c0_17 = arith.constant 0 : index
      %19 = vector.load %arg2[%c0_15, %c0_16, %18, %c0_17] : memref<1x16x24x24xf32, #tpu.memory_space<vmem>>, vector<1x16x1x24xf32>
      %20 = vector.shape_cast %19 : vector<1x16x1x24xf32> to vector<16x24xf32>
      %21 = vector.extract_strided_slice %12 {offsets = [0, 0], sizes = [16, 22], strides = [1, 1]} : vector<16x24xf32> to vector<16x22xf32>
      %22 = vector.extract_strided_slice %12 {offsets = [0, 1], sizes = [16, 22], strides = [1, 1]} : vector<16x24xf32> to vector<16x22xf32>
      %23 = vector.extract_strided_slice %12 {offsets = [0, 2], sizes = [16, 22], strides = [1, 1]} : vector<16x24xf32> to vector<16x22xf32>
      %24 = vector.extract_strided_slice %16 {offsets = [0, 0], sizes = [16, 22], strides = [1, 1]} : vector<16x24xf32> to vector<16x22xf32>
      %25 = vector.extract_strided_slice %16 {offsets = [0, 1], sizes = [16, 22], strides = [1, 1]} : vector<16x24xf32> to vector<16x22xf32>
      %26 = vector.extract_strided_slice %16 {offsets = [0, 2], sizes = [16, 22], strides = [1, 1]} : vector<16x24xf32> to vector<16x22xf32>
      %27 = vector.extract_strided_slice %20 {offsets = [0, 0], sizes = [16, 22], strides = [1, 1]} : vector<16x24xf32> to vector<16x22xf32>
      %28 = vector.extract_strided_slice %20 {offsets = [0, 1], sizes = [16, 22], strides = [1, 1]} : vector<16x24xf32> to vector<16x22xf32>
      %29 = vector.extract_strided_slice %20 {offsets = [0, 2], sizes = [16, 22], strides = [1, 1]} : vector<16x24xf32> to vector<16x22xf32>
      %30 = tpu.concatenate %21, %22, %23, %24, %25, %26, %27, %28, %29 in 0 : vector<16x22xf32>, vector<16x22xf32>, vector<16x22xf32>, vector<16x22xf32>, vector<16x22xf32>, vector<16x22xf32>, vector<16x22xf32>, vector<16x22xf32>, vector<16x22xf32> -> vector<144x22xf32>
      %cst = arith.constant dense<0.000000e+00> : vector<8x22xf32>
      %31 = tpu.matmul %1, %30, %cst {dimension_numbers = #tpu.dot_dimension_numbers<[1], [0], [0], [1], [0, 0, 1, 1], [], []>} : vector<8x144xf32>, vector<144x22xf32>, vector<8x22xf32> -> vector<8x22xf32>
      %32 = vector.broadcast %2 : vector<8x1xf32> to vector<8x22xf32>
      %33 = arith.addf %31, %32 : vector<8x22xf32>
      %c0_18 = arith.constant 0 : index
      %c0_19 = arith.constant 0 : index
      %34 = arith.index_cast %arg6 : i32 to index
      %c0_20 = arith.constant 0 : index
      %35 = vector.load %arg5[%c0_18, %c0_19, %34, %c0_20] : memref<1x8x11x22xf32, #tpu.memory_space<vmem>>, vector<1x8x1x22xf32>
      %36 = vector.shape_cast %35 : vector<1x8x1x22xf32> to vector<8x22xf32>
      %37 = vector.shape_cast %33 : vector<8x22xf32> to vector<1x8x1x22xf32>
      tpu.vector_store %arg5[%c0_18, %c0_19, %34, %c0_20], %37 {strides = array<i32>} : memref<1x8x11x22xf32, #tpu.memory_space<vmem>>, vector<1x8x1x22xf32>,
    }
    return
  }
  func.func @transform_0(%arg0: i32, %arg1: i32) -> (i32, i32, i32, i32) {
    %c0_i32 = arith.constant 0 : i32
    %c0_i32_0 = arith.constant 0 : i32
    %c0_i32_1 = arith.constant 0 : i32
    %c0_i32_2 = arith.constant 0 : i32
    return %arg0, %c0_i32, %c0_i32_0, %c0_i32_1 : i32, i32, i32, i32
  }
  func.func @transform_1(%arg0: i32, %arg1: i32) -> (i32, i32) {
    %c0_i32 = arith.constant 0 : i32
    %c0_i32_0 = arith.constant 0 : i32
    %c0_i32_1 = arith.constant 0 : i32
    return %c0_i32, %c0_i32_0 : i32, i32
  }
  func.func @transform_2(%arg0: i32, %arg1: i32) -> (i32, i32) {
    %c0_i32 = arith.constant 0 : i32
    %c0_i32_0 = arith.constant 0 : i32
    %c0_i32_1 = arith.constant 0 : i32
    return %c0_i32, %c0_i32_0 : i32, i32
  }
  func.func @transform_3(%arg0: i32, %arg1: i32) -> (i32, i32, i32, i32) {
    %c0_i32 = arith.constant 0 : i32
    %c0_i32_0 = arith.constant 0 : i32
    %c0_i32_1 = arith.constant 0 : i32
    return %arg0, %c0_i32, %arg1, %c0_i32_0 : i32, i32, i32, i32
  }
}

module attributes {stable_mosaic.version = 11 : i64} {
  func.func @_maxpool7s3_rows_kernel(%arg0: i32, %arg1: memref<1x8x11x22xf32, #tpu.memory_space<vmem>>, %arg2: memref<1x8x2x10xf32, #tpu.memory_space<vmem>>) attributes {dimension_semantics = [#tpu.dimension_semantics<parallel>], iteration_bounds = array<i64: 2>, scalar_prefetch = 0 : i64, scratch_operands = 0 : i64, tpu.core_type = #tpu.core_type<tc>, window_params = [{transform_indices = @transform_0, window_bounds = array<i64: 1, 8, 11, 22>}, {transform_indices = @transform_1, window_bounds = array<i64: 1, 8, 2, 10>}]} {
    %c0_i32 = arith.constant 0 : i32
    %c2_i32 = arith.constant 2 : i32
    %0 = arith.addi %c0_i32, %c2_i32 : i32
    %c1_i32 = arith.constant 1 : i32
    scf.for %arg3 = %c0_i32 to %0 step %c1_i32  : i32 {
      %c3_i32 = arith.constant 3 : i32
      %1 = arith.muli %c3_i32, %arg3 : i32
      %c0 = arith.constant 0 : index
      %c0_1 = arith.constant 0 : index
      %2 = arith.index_cast %1 : i32 to index
      %c0_2 = arith.constant 0 : index
      %3 = vector.load %arg1[%c0, %c0_1, %2, %c0_2] : memref<1x8x11x22xf32, #tpu.memory_space<vmem>>, vector<1x8x1x22xf32>
      %4 = vector.shape_cast %3 : vector<1x8x1x22xf32> to vector<8x22xf32>
      %c1_i32_3 = arith.constant 1 : i32
      %5 = arith.addi %1, %c1_i32_3 : i32
      %c0_4 = arith.constant 0 : index
      %c0_5 = arith.constant 0 : index
      %6 = arith.index_cast %5 : i32 to index
      %c0_6 = arith.constant 0 : index
      %7 = vector.load %arg1[%c0_4, %c0_5, %6, %c0_6] : memref<1x8x11x22xf32, #tpu.memory_space<vmem>>, vector<1x8x1x22xf32>
      %8 = vector.shape_cast %7 : vector<1x8x1x22xf32> to vector<8x22xf32>
      %9 = arith.maximumf %4, %8 : vector<8x22xf32>
      %c2_i32_7 = arith.constant 2 : i32
      %10 = arith.addi %1, %c2_i32_7 : i32
      %c0_8 = arith.constant 0 : index
      %c0_9 = arith.constant 0 : index
      %11 = arith.index_cast %10 : i32 to index
      %c0_10 = arith.constant 0 : index
      %12 = vector.load %arg1[%c0_8, %c0_9, %11, %c0_10] : memref<1x8x11x22xf32, #tpu.memory_space<vmem>>, vector<1x8x1x22xf32>
      %13 = vector.shape_cast %12 : vector<1x8x1x22xf32> to vector<8x22xf32>
      %14 = arith.maximumf %9, %13 : vector<8x22xf32>
      %c3_i32_11 = arith.constant 3 : i32
      %15 = arith.addi %1, %c3_i32_11 : i32
      %c0_12 = arith.constant 0 : index
      %c0_13 = arith.constant 0 : index
      %16 = arith.index_cast %15 : i32 to index
      %c0_14 = arith.constant 0 : index
      %17 = vector.load %arg1[%c0_12, %c0_13, %16, %c0_14] : memref<1x8x11x22xf32, #tpu.memory_space<vmem>>, vector<1x8x1x22xf32>
      %18 = vector.shape_cast %17 : vector<1x8x1x22xf32> to vector<8x22xf32>
      %19 = arith.maximumf %14, %18 : vector<8x22xf32>
      %c4_i32 = arith.constant 4 : i32
      %20 = arith.addi %1, %c4_i32 : i32
      %c0_15 = arith.constant 0 : index
      %c0_16 = arith.constant 0 : index
      %21 = arith.index_cast %20 : i32 to index
      %c0_17 = arith.constant 0 : index
      %22 = vector.load %arg1[%c0_15, %c0_16, %21, %c0_17] : memref<1x8x11x22xf32, #tpu.memory_space<vmem>>, vector<1x8x1x22xf32>
      %23 = vector.shape_cast %22 : vector<1x8x1x22xf32> to vector<8x22xf32>
      %24 = arith.maximumf %19, %23 : vector<8x22xf32>
      %c5_i32 = arith.constant 5 : i32
      %25 = arith.addi %1, %c5_i32 : i32
      %c0_18 = arith.constant 0 : index
      %c0_19 = arith.constant 0 : index
      %26 = arith.index_cast %25 : i32 to index
      %c0_20 = arith.constant 0 : index
      %27 = vector.load %arg1[%c0_18, %c0_19, %26, %c0_20] : memref<1x8x11x22xf32, #tpu.memory_space<vmem>>, vector<1x8x1x22xf32>
      %28 = vector.shape_cast %27 : vector<1x8x1x22xf32> to vector<8x22xf32>
      %29 = arith.maximumf %24, %28 : vector<8x22xf32>
      %c6_i32 = arith.constant 6 : i32
      %30 = arith.addi %1, %c6_i32 : i32
      %c0_21 = arith.constant 0 : index
      %c0_22 = arith.constant 0 : index
      %31 = arith.index_cast %30 : i32 to index
      %c0_23 = arith.constant 0 : index
      %32 = vector.load %arg1[%c0_21, %c0_22, %31, %c0_23] : memref<1x8x11x22xf32, #tpu.memory_space<vmem>>, vector<1x8x1x22xf32>
      %33 = vector.shape_cast %32 : vector<1x8x1x22xf32> to vector<8x22xf32>
      %34 = arith.maximumf %29, %33 : vector<8x22xf32>
      %35 = vector.extract_strided_slice %34 {offsets = [0, 0], sizes = [8, 10], strides = [1, 1]} : vector<8x22xf32> to vector<8x10xf32>
      %36 = vector.extract_strided_slice %34 {offsets = [0, 2], sizes = [8, 10], strides = [1, 1]} : vector<8x22xf32> to vector<8x10xf32>
      %37 = arith.maximumf %35, %36 : vector<8x10xf32>
      %38 = vector.extract_strided_slice %34 {offsets = [0, 4], sizes = [8, 10], strides = [1, 1]} : vector<8x22xf32> to vector<8x10xf32>
      %39 = arith.maximumf %37, %38 : vector<8x10xf32>
      %40 = vector.extract_strided_slice %34 {offsets = [0, 6], sizes = [8, 10], strides = [1, 1]} : vector<8x22xf32> to vector<8x10xf32>
      %41 = arith.maximumf %39, %40 : vector<8x10xf32>
      %42 = vector.extract_strided_slice %34 {offsets = [0, 8], sizes = [8, 10], strides = [1, 1]} : vector<8x22xf32> to vector<8x10xf32>
      %43 = arith.maximumf %41, %42 : vector<8x10xf32>
      %44 = vector.extract_strided_slice %34 {offsets = [0, 10], sizes = [8, 10], strides = [1, 1]} : vector<8x22xf32> to vector<8x10xf32>
      %45 = arith.maximumf %43, %44 : vector<8x10xf32>
      %46 = vector.extract_strided_slice %34 {offsets = [0, 12], sizes = [8, 10], strides = [1, 1]} : vector<8x22xf32> to vector<8x10xf32>
      %47 = arith.maximumf %45, %46 : vector<8x10xf32>
      %c0_24 = arith.constant 0 : index
      %c0_25 = arith.constant 0 : index
      %48 = arith.index_cast %arg3 : i32 to index
      %c0_26 = arith.constant 0 : index
      %49 = vector.load %arg2[%c0_24, %c0_25, %48, %c0_26] : memref<1x8x2x10xf32, #tpu.memory_space<vmem>>, vector<1x8x1x10xf32>
      %50 = vector.shape_cast %49 : vector<1x8x1x10xf32> to vector<8x10xf32>
      %51 = vector.shape_cast %47 : vector<8x10xf32> to vector<1x8x1x10xf32>
      tpu.vector_store %arg2[%c0_24, %c0_25, %48, %c0_26], %51 {strides = array<i32>} : memref<1x8x2x10xf32, #tpu.memory_space<vmem>>, vector<1x8x1x10xf32>,
    }
    %c2_i32_0 = arith.constant 2 : i32
    return
  }
  func.func @transform_0(%arg0: i32) -> (i32, i32, i32, i32) {
    %c0_i32 = arith.constant 0 : i32
    %c0_i32_0 = arith.constant 0 : i32
    %c0_i32_1 = arith.constant 0 : i32
    %c0_i32_2 = arith.constant 0 : i32
    return %arg0, %c0_i32, %c0_i32_0, %c0_i32_1 : i32, i32, i32, i32
  }
  func.func @transform_1(%arg0: i32) -> (i32, i32, i32, i32) {
    %c0_i32 = arith.constant 0 : i32
    %c0_i32_0 = arith.constant 0 : i32
    %c0_i32_1 = arith.constant 0 : i32
    %c0_i32_2 = arith.constant 0 : i32
    return %arg0, %c0_i32, %c0_i32_0, %c0_i32_1 : i32, i32, i32, i32
  }
}

module attributes {stable_mosaic.version = 11 : i64} {
  func.func @_conv3x3_rows_kernel(%arg0: i32, %arg1: i32, %arg2: memref<1x8x4x4xf32, #tpu.memory_space<vmem>>, %arg3: memref<8x72xf32, #tpu.memory_space<vmem>>, %arg4: memref<8x1xf32, #tpu.memory_space<vmem>>, %arg5: memref<1x8x2x2xf32, #tpu.memory_space<vmem>>) attributes {dimension_semantics = [#tpu.dimension_semantics<parallel>, #tpu.dimension_semantics<parallel>], iteration_bounds = array<i64: 2, 1>, scalar_prefetch = 0 : i64, scratch_operands = 0 : i64, tpu.core_type = #tpu.core_type<tc>, window_params = [{transform_indices = @transform_0, window_bounds = array<i64: 1, 8, 4, 4>}, {pipeline_mode = #tpu.pipeline_mode<synchronous>, transform_indices = @transform_1, window_bounds = array<i64: 8, 72>}, {pipeline_mode = #tpu.pipeline_mode<synchronous>, transform_indices = @transform_2, window_bounds = array<i64: 8, 1>}, {transform_indices = @transform_3, window_bounds = array<i64: 1, 8, 2, 2>}]} {
    %c2_i32 = arith.constant 2 : i32
    %0 = arith.muli %arg1, %c2_i32 : i32
    %c0 = arith.constant 0 : index
    %c0_0 = arith.constant 0 : index
    %1 = vector.load %arg3[%c0, %c0_0] : memref<8x72xf32, #tpu.memory_space<vmem>>, vector<8x72xf32>
    %c0_1 = arith.constant 0 : index
    %c0_2 = arith.constant 0 : index
    %2 = vector.load %arg4[%c0_1, %c0_2] : memref<8x1xf32, #tpu.memory_space<vmem>>, vector<8x1xf32>
    %c2_i32_3 = arith.constant 2 : i32
    %3 = arith.subi %c2_i32_3, %0 : i32
    %c2_i32_4 = arith.constant 2 : i32
    %4 = arith.minsi %c2_i32_4, %3 : i32
    %c0_i32 = arith.constant 0 : i32
    %c0_i32_5 = arith.constant 0 : i32
    %5 = arith.subi %4, %c0_i32_5 : i32
    %6 = arith.addi %c0_i32_5, %5 : i32
    %c1_i32 = arith.constant 1 : i32
    scf.for %arg6 = %c0_i32_5 to %6 step %c1_i32  : i32 {
      %7 = arith.addi %0, %arg6 : i32
      %c1_i32_6 = arith.constant 1 : i32
      %8 = arith.muli %c1_i32_6, %7 : i32
      %c0_i32_7 = arith.constant 0 : i32
      %9 = arith.addi %8, %c0_i32_7 : i32
      %c0_8 = arith.constant 0 : index
      %c0_9 = arith.constant 0 : index
      %10 = arith.index_cast %9 : i32 to index
      %c0_10 = arith.constant 0 : index
      %11 = vector.load %arg2[%c0_8, %c0_9, %10, %c0_10] : memref<1x8x4x4xf32, #tpu.memory_space<vmem>>, vector<1x8x1x4xf32>
      %12 = vector.shape_cast %11 : vector<1x8x1x4xf32> to vector<8x4xf32>
      %c1_i32_11 = arith.constant 1 : i32
      %13 = arith.addi %8, %c1_i32_11 : i32
      %c0_12 = arith.constant 0 : index
      %c0_13 = arith.constant 0 : index
      %14 = arith.index_cast %13 : i32 to index
      %c0_14 = arith.constant 0 : index
      %15 = vector.load %arg2[%c0_12, %c0_13, %14, %c0_14] : memref<1x8x4x4xf32, #tpu.memory_space<vmem>>, vector<1x8x1x4xf32>
      %16 = vector.shape_cast %15 : vector<1x8x1x4xf32> to vector<8x4xf32>
      %c2_i32_15 = arith.constant 2 : i32
      %17 = arith.addi %8, %c2_i32_15 : i32
      %c0_16 = arith.constant 0 : index
      %c0_17 = arith.constant 0 : index
      %18 = arith.index_cast %17 : i32 to index
      %c0_18 = arith.constant 0 : index
      %19 = vector.load %arg2[%c0_16, %c0_17, %18, %c0_18] : memref<1x8x4x4xf32, #tpu.memory_space<vmem>>, vector<1x8x1x4xf32>
      %20 = vector.shape_cast %19 : vector<1x8x1x4xf32> to vector<8x4xf32>
      %21 = vector.extract_strided_slice %12 {offsets = [0, 0], sizes = [8, 2], strides = [1, 1]} : vector<8x4xf32> to vector<8x2xf32>
      %22 = vector.extract_strided_slice %12 {offsets = [0, 1], sizes = [8, 2], strides = [1, 1]} : vector<8x4xf32> to vector<8x2xf32>
      %23 = vector.extract_strided_slice %12 {offsets = [0, 2], sizes = [8, 2], strides = [1, 1]} : vector<8x4xf32> to vector<8x2xf32>
      %24 = vector.extract_strided_slice %16 {offsets = [0, 0], sizes = [8, 2], strides = [1, 1]} : vector<8x4xf32> to vector<8x2xf32>
      %25 = vector.extract_strided_slice %16 {offsets = [0, 1], sizes = [8, 2], strides = [1, 1]} : vector<8x4xf32> to vector<8x2xf32>
      %26 = vector.extract_strided_slice %16 {offsets = [0, 2], sizes = [8, 2], strides = [1, 1]} : vector<8x4xf32> to vector<8x2xf32>
      %27 = vector.extract_strided_slice %20 {offsets = [0, 0], sizes = [8, 2], strides = [1, 1]} : vector<8x4xf32> to vector<8x2xf32>
      %28 = vector.extract_strided_slice %20 {offsets = [0, 1], sizes = [8, 2], strides = [1, 1]} : vector<8x4xf32> to vector<8x2xf32>
      %29 = vector.extract_strided_slice %20 {offsets = [0, 2], sizes = [8, 2], strides = [1, 1]} : vector<8x4xf32> to vector<8x2xf32>
      %30 = tpu.concatenate %21, %22, %23, %24, %25, %26, %27, %28, %29 in 0 : vector<8x2xf32>, vector<8x2xf32>, vector<8x2xf32>, vector<8x2xf32>, vector<8x2xf32>, vector<8x2xf32>, vector<8x2xf32>, vector<8x2xf32>, vector<8x2xf32> -> vector<72x2xf32>
      %cst = arith.constant dense<0.000000e+00> : vector<8x2xf32>
      %31 = tpu.matmul %1, %30, %cst {dimension_numbers = #tpu.dot_dimension_numbers<[1], [0], [0], [1], [0, 0, 1, 1], [], []>} : vector<8x72xf32>, vector<72x2xf32>, vector<8x2xf32> -> vector<8x2xf32>
      %32 = vector.broadcast %2 : vector<8x1xf32> to vector<8x2xf32>
      %33 = arith.addf %31, %32 : vector<8x2xf32>
      %c0_19 = arith.constant 0 : index
      %c0_20 = arith.constant 0 : index
      %34 = arith.index_cast %arg6 : i32 to index
      %c0_21 = arith.constant 0 : index
      %35 = vector.load %arg5[%c0_19, %c0_20, %34, %c0_21] : memref<1x8x2x2xf32, #tpu.memory_space<vmem>>, vector<1x8x1x2xf32>
      %36 = vector.shape_cast %35 : vector<1x8x1x2xf32> to vector<8x2xf32>
      %37 = vector.shape_cast %33 : vector<8x2xf32> to vector<1x8x1x2xf32>
      tpu.vector_store %arg5[%c0_19, %c0_20, %34, %c0_21], %37 {strides = array<i32>} : memref<1x8x2x2xf32, #tpu.memory_space<vmem>>, vector<1x8x1x2xf32>,
    }
    return
  }
  func.func @transform_0(%arg0: i32, %arg1: i32) -> (i32, i32, i32, i32) {
    %c0_i32 = arith.constant 0 : i32
    %c0_i32_0 = arith.constant 0 : i32
    %c0_i32_1 = arith.constant 0 : i32
    %c0_i32_2 = arith.constant 0 : i32
    return %arg0, %c0_i32, %c0_i32_0, %c0_i32_1 : i32, i32, i32, i32
  }
  func.func @transform_1(%arg0: i32, %arg1: i32) -> (i32, i32) {
    %c0_i32 = arith.constant 0 : i32
    %c0_i32_0 = arith.constant 0 : i32
    %c0_i32_1 = arith.constant 0 : i32
    return %c0_i32, %c0_i32_0 : i32, i32
  }
  func.func @transform_2(%arg0: i32, %arg1: i32) -> (i32, i32) {
    %c0_i32 = arith.constant 0 : i32
    %c0_i32_0 = arith.constant 0 : i32
    %c0_i32_1 = arith.constant 0 : i32
    return %c0_i32, %c0_i32_0 : i32, i32
  }
  func.func @transform_3(%arg0: i32, %arg1: i32) -> (i32, i32, i32, i32) {
    %c0_i32 = arith.constant 0 : i32
    %c0_i32_0 = arith.constant 0 : i32
    %c0_i32_1 = arith.constant 0 : i32
    return %arg0, %c0_i32, %arg1, %c0_i32_0 : i32, i32, i32, i32
  }
}

module attributes {stable_mosaic.version = 11 : i64} {
  func.func @_esa_tail_kernel(%arg0: i32, %arg1: i32, %arg2: memref<1x16x24x24xf32, #tpu.memory_space<vmem>>, %arg3: memref<1x8x2x2xf32, #tpu.memory_space<vmem>>, %arg4: memref<24x2xf32, #tpu.memory_space<vmem>>, %arg5: memref<2x24xf32, #tpu.memory_space<vmem>>, %arg6: memref<16x8xf32, #tpu.memory_space<vmem>>, %arg7: memref<16x16xf32, #tpu.memory_space<vmem>>, %arg8: memref<16x1xf32, #tpu.memory_space<vmem>>, %arg9: memref<1x16x24x24xf32, #tpu.memory_space<vmem>>, %arg10: memref<8x24x24xf32, #tpu.memory_space<vmem>>) attributes {dimension_semantics = [#tpu.dimension_semantics<parallel>, #tpu.dimension_semantics<parallel>], iteration_bounds = array<i64: 2, 1>, scalar_prefetch = 0 : i64, scratch_operands = 1 : i64, tpu.core_type = #tpu.core_type<tc>, window_params = [{transform_indices = @transform_0, window_bounds = array<i64: 1, 16, 24, 24>}, {transform_indices = @transform_1, window_bounds = array<i64: 1, 8, 2, 2>}, {transform_indices = @transform_2, window_bounds = array<i64: 24, 2>}, {pipeline_mode = #tpu.pipeline_mode<synchronous>, transform_indices = @transform_3, window_bounds = array<i64: 2, 24>}, {pipeline_mode = #tpu.pipeline_mode<synchronous>, transform_indices = @transform_4, window_bounds = array<i64: 16, 8>}, {pipeline_mode = #tpu.pipeline_mode<synchronous>, transform_indices = @transform_5, window_bounds = array<i64: 16, 16>}, {pipeline_mode = #tpu.pipeline_mode<synchronous>, transform_indices = @transform_6, window_bounds = array<i64: 16, 1>}, {transform_indices = @transform_7, window_bounds = array<i64: 1, 16, 24, 24>}]} {
    %c24_i32 = arith.constant 24 : i32
    %0 = arith.muli %arg1, %c24_i32 : i32
    %c0 = arith.constant 0 : index
    %c0_0 = arith.constant 0 : index
    %1 = vector.load %arg4[%c0, %c0_0] : memref<24x2xf32, #tpu.memory_space<vmem>>, vector<24x2xf32>
    %c0_1 = arith.constant 0 : index
    %c0_2 = arith.constant 0 : index
    %2 = vector.load %arg5[%c0_1, %c0_2] : memref<2x24xf32, #tpu.memory_space<vmem>>, vector<2x24xf32>
    %c0_3 = arith.constant 0 : index
    %c0_4 = arith.constant 0 : index
    %3 = vector.load %arg6[%c0_3, %c0_4] : memref<16x8xf32, #tpu.memory_space<vmem>>, vector<16x8xf32>
    %c0_5 = arith.constant 0 : index
    %c0_6 = arith.constant 0 : index
    %4 = vector.load %arg7[%c0_5, %c0_6] : memref<16x16xf32, #tpu.memory_space<vmem>>, vector<16x16xf32>
    %c0_7 = arith.constant 0 : index
    %c0_8 = arith.constant 0 : index
    %5 = vector.load %arg8[%c0_7, %c0_8] : memref<16x1xf32, #tpu.memory_space<vmem>>, vector<16x1xf32>
    %c0_9 = arith.constant 0 : index
    %c0_10 = arith.constant 0 : index
    %c0_11 = arith.constant 0 : index
    %c0_12 = arith.constant 0 : index
    %6 = vector.load %arg3[%c0_9, %c0_10, %c0_11, %c0_12] : memref<1x8x2x2xf32, #tpu.memory_space<vmem>>, vector<1x1x2x2xf32>
    %7 = vector.shape_cast %6 : vector<1x1x2x2xf32> to vector<2x2xf32>
    %cst = arith.constant dense<0.000000e+00> : vector<24x2xf32>
    %8 = tpu.matmul %1, %7, %cst {dimension_numbers = #tpu.dot_dimension_numbers<[1], [0], [0], [1], [0, 0, 1, 1], [], []>} : vector<24x2xf32>, vector<2x2xf32>, vector<24x2xf32> -> vector<24x2xf32>
    %cst_13 = arith.constant dense<0.000000e+00> : vector<24x24xf32>
    %9 = tpu.matmul %8, %2, %cst_13 {dimension_numbers = #tpu.dot_dimension_numbers<[1], [0], [0], [1], [0, 0, 1, 1], [], []>} : vector<24x2xf32>, vector<2x24xf32>, vector<24x24xf32> -> vector<24x24xf32>
    %c0_14 = arith.constant 0 : index
    %c0_15 = arith.constant 0 : index
    %c0_16 = arith.constant 0 : index
    %10 = vector.load %arg10[%c0_14, %c0_15, %c0_16] : memref<8x24x24xf32, #tpu.memory_space<vmem>>, vector<1x24x24xf32>
    %11 = vector.shape_cast %10 : vector<1x24x24xf32> to vector<24x24xf32>
    %12 = vector.shape_cast %9 : vector<24x24xf32> to vector<1x24x24xf32>
    tpu.vector_store %arg10[%c0_14, %c0_15, %c0_16], %12 {strides = array<i32>} : memref<8x24x24xf32, #tpu.memory_space<vmem>>, vector<1x24x24xf32>,
    %c0_17 = arith.constant 0 : index
    %c1 = arith.constant 1 : index
    %c0_18 = arith.constant 0 : index
    %c0_19 = arith.constant 0 : index
    %13 = vector.load %arg3[%c0_17, %c1, %c0_18, %c0_19] : memref<1x8x2x2xf32, #tpu.memory_space<vmem>>, vector<1x1x2x2xf32>
    %14 = vector.shape_cast %13 : vector<1x1x2x2xf32> to vector<2x2xf32>
    %cst_20 = arith.constant dense<0.000000e+00> : vector<24x2xf32>
    %15 = tpu.matmul %1, %14, %cst_20 {dimension_numbers = #tpu.dot_dimension_numbers<[1], [0], [0], [1], [0, 0, 1, 1], [], []>} : vector<24x2xf32>, vector<2x2xf32>, vector<24x2xf32> -> vector<24x2xf32>
    %cst_21 = arith.constant dense<0.000000e+00> : vector<24x24xf32>
    %16 = tpu.matmul %15, %2, %cst_21 {dimension_numbers = #tpu.dot_dimension_numbers<[1], [0], [0], [1], [0, 0, 1, 1], [], []>} : vector<24x2xf32>, vector<2x24xf32>, vector<24x24xf32> -> vector<24x24xf32>
    %c1_22 = arith.constant 1 : index
    %c0_23 = arith.constant 0 : index
    %c0_24 = arith.constant 0 : index
    %17 = vector.load %arg10[%c1_22, %c0_23, %c0_24] : memref<8x24x24xf32, #tpu.memory_space<vmem>>, vector<1x24x24xf32>
    %18 = vector.shape_cast %17 : vector<1x24x24xf32> to vector<24x24xf32>
    %19 = vector.shape_cast %16 : vector<24x24xf32> to vector<1x24x24xf32>
    tpu.vector_store %arg10[%c1_22, %c0_23, %c0_24], %19 {strides = array<i32>} : memref<8x24x24xf32, #tpu.memory_space<vmem>>, vector<1x24x24xf32>,
    %c0_25 = arith.constant 0 : index
    %c2 = arith.constant 2 : index
    %c0_26 = arith.constant 0 : index
    %c0_27 = arith.constant 0 : index
    %20 = vector.load %arg3[%c0_25, %c2, %c0_26, %c0_27] : memref<1x8x2x2xf32, #tpu.memory_space<vmem>>, vector<1x1x2x2xf32>
    %21 = vector.shape_cast %20 : vector<1x1x2x2xf32> to vector<2x2xf32>
    %cst_28 = arith.constant dense<0.000000e+00> : vector<24x2xf32>
    %22 = tpu.matmul %1, %21, %cst_28 {dimension_numbers = #tpu.dot_dimension_numbers<[1], [0], [0], [1], [0, 0, 1, 1], [], []>} : vector<24x2xf32>, vector<2x2xf32>, vector<24x2xf32> -> vector<24x2xf32>
    %cst_29 = arith.constant dense<0.000000e+00> : vector<24x24xf32>
    %23 = tpu.matmul %22, %2, %cst_29 {dimension_numbers = #tpu.dot_dimension_numbers<[1], [0], [0], [1], [0, 0, 1, 1], [], []>} : vector<24x2xf32>, vector<2x24xf32>, vector<24x24xf32> -> vector<24x24xf32>
    %c2_30 = arith.constant 2 : index
    %c0_31 = arith.constant 0 : index
    %c0_32 = arith.constant 0 : index
    %24 = vector.load %arg10[%c2_30, %c0_31, %c0_32] : memref<8x24x24xf32, #tpu.memory_space<vmem>>, vector<1x24x24xf32>
    %25 = vector.shape_cast %24 : vector<1x24x24xf32> to vector<24x24xf32>
    %26 = vector.shape_cast %23 : vector<24x24xf32> to vector<1x24x24xf32>
    tpu.vector_store %arg10[%c2_30, %c0_31, %c0_32], %26 {strides = array<i32>} : memref<8x24x24xf32, #tpu.memory_space<vmem>>, vector<1x24x24xf32>,
    %c0_33 = arith.constant 0 : index
    %c3 = arith.constant 3 : index
    %c0_34 = arith.constant 0 : index
    %c0_35 = arith.constant 0 : index
    %27 = vector.load %arg3[%c0_33, %c3, %c0_34, %c0_35] : memref<1x8x2x2xf32, #tpu.memory_space<vmem>>, vector<1x1x2x2xf32>
    %28 = vector.shape_cast %27 : vector<1x1x2x2xf32> to vector<2x2xf32>
    %cst_36 = arith.constant dense<0.000000e+00> : vector<24x2xf32>
    %29 = tpu.matmul %1, %28, %cst_36 {dimension_numbers = #tpu.dot_dimension_numbers<[1], [0], [0], [1], [0, 0, 1, 1], [], []>} : vector<24x2xf32>, vector<2x2xf32>, vector<24x2xf32> -> vector<24x2xf32>
    %cst_37 = arith.constant dense<0.000000e+00> : vector<24x24xf32>
    %30 = tpu.matmul %29, %2, %cst_37 {dimension_numbers = #tpu.dot_dimension_numbers<[1], [0], [0], [1], [0, 0, 1, 1], [], []>} : vector<24x2xf32>, vector<2x24xf32>, vector<24x24xf32> -> vector<24x24xf32>
    %c3_38 = arith.constant 3 : index
    %c0_39 = arith.constant 0 : index
    %c0_40 = arith.constant 0 : index
    %31 = vector.load %arg10[%c3_38, %c0_39, %c0_40] : memref<8x24x24xf32, #tpu.memory_space<vmem>>, vector<1x24x24xf32>
    %32 = vector.shape_cast %31 : vector<1x24x24xf32> to vector<24x24xf32>
    %33 = vector.shape_cast %30 : vector<24x24xf32> to vector<1x24x24xf32>
    tpu.vector_store %arg10[%c3_38, %c0_39, %c0_40], %33 {strides = array<i32>} : memref<8x24x24xf32, #tpu.memory_space<vmem>>, vector<1x24x24xf32>,
    %c0_41 = arith.constant 0 : index
    %c4 = arith.constant 4 : index
    %c0_42 = arith.constant 0 : index
    %c0_43 = arith.constant 0 : index
    %34 = vector.load %arg3[%c0_41, %c4, %c0_42, %c0_43] : memref<1x8x2x2xf32, #tpu.memory_space<vmem>>, vector<1x1x2x2xf32>
    %35 = vector.shape_cast %34 : vector<1x1x2x2xf32> to vector<2x2xf32>
    %cst_44 = arith.constant dense<0.000000e+00> : vector<24x2xf32>
    %36 = tpu.matmul %1, %35, %cst_44 {dimension_numbers = #tpu.dot_dimension_numbers<[1], [0], [0], [1], [0, 0, 1, 1], [], []>} : vector<24x2xf32>, vector<2x2xf32>, vector<24x2xf32> -> vector<24x2xf32>
    %cst_45 = arith.constant dense<0.000000e+00> : vector<24x24xf32>
    %37 = tpu.matmul %36, %2, %cst_45 {dimension_numbers = #tpu.dot_dimension_numbers<[1], [0], [0], [1], [0, 0, 1, 1], [], []>} : vector<24x2xf32>, vector<2x24xf32>, vector<24x24xf32> -> vector<24x24xf32>
    %c4_46 = arith.constant 4 : index
    %c0_47 = arith.constant 0 : index
    %c0_48 = arith.constant 0 : index
    %38 = vector.load %arg10[%c4_46, %c0_47, %c0_48] : memref<8x24x24xf32, #tpu.memory_space<vmem>>, vector<1x24x24xf32>
    %39 = vector.shape_cast %38 : vector<1x24x24xf32> to vector<24x24xf32>
    %40 = vector.shape_cast %37 : vector<24x24xf32> to vector<1x24x24xf32>
    tpu.vector_store %arg10[%c4_46, %c0_47, %c0_48], %40 {strides = array<i32>} : memref<8x24x24xf32, #tpu.memory_space<vmem>>, vector<1x24x24xf32>,
    %c0_49 = arith.constant 0 : index
    %c5 = arith.constant 5 : index
    %c0_50 = arith.constant 0 : index
    %c0_51 = arith.constant 0 : index
    %41 = vector.load %arg3[%c0_49, %c5, %c0_50, %c0_51] : memref<1x8x2x2xf32, #tpu.memory_space<vmem>>, vector<1x1x2x2xf32>
    %42 = vector.shape_cast %41 : vector<1x1x2x2xf32> to vector<2x2xf32>
    %cst_52 = arith.constant dense<0.000000e+00> : vector<24x2xf32>
    %43 = tpu.matmul %1, %42, %cst_52 {dimension_numbers = #tpu.dot_dimension_numbers<[1], [0], [0], [1], [0, 0, 1, 1], [], []>} : vector<24x2xf32>, vector<2x2xf32>, vector<24x2xf32> -> vector<24x2xf32>
    %cst_53 = arith.constant dense<0.000000e+00> : vector<24x24xf32>
    %44 = tpu.matmul %43, %2, %cst_53 {dimension_numbers = #tpu.dot_dimension_numbers<[1], [0], [0], [1], [0, 0, 1, 1], [], []>} : vector<24x2xf32>, vector<2x24xf32>, vector<24x24xf32> -> vector<24x24xf32>
    %c5_54 = arith.constant 5 : index
    %c0_55 = arith.constant 0 : index
    %c0_56 = arith.constant 0 : index
    %45 = vector.load %arg10[%c5_54, %c0_55, %c0_56] : memref<8x24x24xf32, #tpu.memory_space<vmem>>, vector<1x24x24xf32>
    %46 = vector.shape_cast %45 : vector<1x24x24xf32> to vector<24x24xf32>
    %47 = vector.shape_cast %44 : vector<24x24xf32> to vector<1x24x24xf32>
    tpu.vector_store %arg10[%c5_54, %c0_55, %c0_56], %47 {strides = array<i32>} : memref<8x24x24xf32, #tpu.memory_space<vmem>>, vector<1x24x24xf32>,
    %c0_57 = arith.constant 0 : index
    %c6 = arith.constant 6 : index
    %c0_58 = arith.constant 0 : index
    %c0_59 = arith.constant 0 : index
    %48 = vector.load %arg3[%c0_57, %c6, %c0_58, %c0_59] : memref<1x8x2x2xf32, #tpu.memory_space<vmem>>, vector<1x1x2x2xf32>
    %49 = vector.shape_cast %48 : vector<1x1x2x2xf32> to vector<2x2xf32>
    %cst_60 = arith.constant dense<0.000000e+00> : vector<24x2xf32>
    %50 = tpu.matmul %1, %49, %cst_60 {dimension_numbers = #tpu.dot_dimension_numbers<[1], [0], [0], [1], [0, 0, 1, 1], [], []>} : vector<24x2xf32>, vector<2x2xf32>, vector<24x2xf32> -> vector<24x2xf32>
    %cst_61 = arith.constant dense<0.000000e+00> : vector<24x24xf32>
    %51 = tpu.matmul %50, %2, %cst_61 {dimension_numbers = #tpu.dot_dimension_numbers<[1], [0], [0], [1], [0, 0, 1, 1], [], []>} : vector<24x2xf32>, vector<2x24xf32>, vector<24x24xf32> -> vector<24x24xf32>
    %c6_62 = arith.constant 6 : index
    %c0_63 = arith.constant 0 : index
    %c0_64 = arith.constant 0 : index
    %52 = vector.load %arg10[%c6_62, %c0_63, %c0_64] : memref<8x24x24xf32, #tpu.memory_space<vmem>>, vector<1x24x24xf32>
    %53 = vector.shape_cast %52 : vector<1x24x24xf32> to vector<24x24xf32>
    %54 = vector.shape_cast %51 : vector<24x24xf32> to vector<1x24x24xf32>
    tpu.vector_store %arg10[%c6_62, %c0_63, %c0_64], %54 {strides = array<i32>} : memref<8x24x24xf32, #tpu.memory_space<vmem>>, vector<1x24x24xf32>,
    %c0_65 = arith.constant 0 : index
    %c7 = arith.constant 7 : index
    %c0_66 = arith.constant 0 : index
    %c0_67 = arith.constant 0 : index
    %55 = vector.load %arg3[%c0_65, %c7, %c0_66, %c0_67] : memref<1x8x2x2xf32, #tpu.memory_space<vmem>>, vector<1x1x2x2xf32>
    %56 = vector.shape_cast %55 : vector<1x1x2x2xf32> to vector<2x2xf32>
    %cst_68 = arith.constant dense<0.000000e+00> : vector<24x2xf32>
    %57 = tpu.matmul %1, %56, %cst_68 {dimension_numbers = #tpu.dot_dimension_numbers<[1], [0], [0], [1], [0, 0, 1, 1], [], []>} : vector<24x2xf32>, vector<2x2xf32>, vector<24x2xf32> -> vector<24x2xf32>
    %cst_69 = arith.constant dense<0.000000e+00> : vector<24x24xf32>
    %58 = tpu.matmul %57, %2, %cst_69 {dimension_numbers = #tpu.dot_dimension_numbers<[1], [0], [0], [1], [0, 0, 1, 1], [], []>} : vector<24x2xf32>, vector<2x24xf32>, vector<24x24xf32> -> vector<24x24xf32>
    %c7_70 = arith.constant 7 : index
    %c0_71 = arith.constant 0 : index
    %c0_72 = arith.constant 0 : index
    %59 = vector.load %arg10[%c7_70, %c0_71, %c0_72] : memref<8x24x24xf32, #tpu.memory_space<vmem>>, vector<1x24x24xf32>
    %60 = vector.shape_cast %59 : vector<1x24x24xf32> to vector<24x24xf32>
    %61 = vector.shape_cast %58 : vector<24x24xf32> to vector<1x24x24xf32>
    tpu.vector_store %arg10[%c7_70, %c0_71, %c0_72], %61 {strides = array<i32>} : memref<8x24x24xf32, #tpu.memory_space<vmem>>, vector<1x24x24xf32>,
    %c24_i32_73 = arith.constant 24 : i32
    %62 = arith.subi %c24_i32_73, %0 : i32
    %c24_i32_74 = arith.constant 24 : i32
    %63 = arith.minsi %c24_i32_74, %62 : i32
    %c0_i32 = arith.constant 0 : i32
    %c0_i32_75 = arith.constant 0 : i32
    %64 = arith.subi %63, %c0_i32_75 : i32
    %65 = arith.addi %c0_i32_75, %64 : i32
    %c1_i32 = arith.constant 1 : i32
    scf.for %arg11 = %c0_i32_75 to %65 step %c1_i32  : i32 {
      %c0_76 = arith.constant 0 : index
      %c0_77 = arith.constant 0 : index
      %66 = arith.index_cast %arg11 : i32 to index
      %c0_78 = arith.constant 0 : index
      %67 = vector.load %arg2[%c0_76, %c0_77, %66, %c0_78] : memref<1x16x24x24xf32, #tpu.memory_space<vmem>>, vector<1x16x1x24xf32>
      %68 = vector.shape_cast %67 : vector<1x16x1x24xf32> to vector<16x24xf32>
      %c0_79 = arith.constant 0 : index
      %69 = arith.index_cast %arg11 : i32 to index
      %c0_80 = arith.constant 0 : index
      %70 = vector.load %arg10[%c0_79, %69, %c0_80] : memref<8x24x24xf32, #tpu.memory_space<vmem>>, vector<8x1x24xf32>
      %71 = vector.shape_cast %70 : vector<8x1x24xf32> to vector<8x24xf32>
      %cst_81 = arith.constant dense<0.000000e+00> : vector<16x24xf32>
      %72 = tpu.matmul %3, %71, %cst_81 {dimension_numbers = #tpu.dot_dimension_numbers<[1], [0], [0], [1], [0, 0, 1, 1], [], []>} : vector<16x8xf32>, vector<8x24xf32>, vector<16x24xf32> -> vector<16x24xf32>
      %cst_82 = arith.constant dense<0.000000e+00> : vector<16x24xf32>
      %73 = tpu.matmul %4, %68, %cst_82 {dimension_numbers = #tpu.dot_dimension_numbers<[1], [0], [0], [1], [0, 0, 1, 1], [], []>} : vector<16x16xf32>, vector<16x24xf32>, vector<16x24xf32> -> vector<16x24xf32>
      %74 = arith.addf %72, %73 : vector<16x24xf32>
      %75 = vector.broadcast %5 : vector<16x1xf32> to vector<16x24xf32>
      %76 = arith.addf %74, %75 : vector<16x24xf32>
      %77 = math.absf %76 : vector<16x24xf32>
      %cst_83 = arith.constant 0.000000e+00 : f32
      %78 = vector.broadcast %cst_83 : f32 to vector<16x24xf32>
      %79 = arith.subf %78, %77 : vector<16x24xf32>
      %80 = math.exp %79 : vector<16x24xf32>
      %cst_84 = arith.constant 1.000000e+00 : f32
      %81 = vector.broadcast %cst_84 : f32 to vector<16x24xf32>
      %82 = arith.addf %81, %80 : vector<16x24xf32>
      %83 = tpu.reciprocal %82 : vector<16x24xf32> -> vector<16x24xf32>
      %cst_85 = arith.constant 0.000000e+00 : f32
      %84 = vector.broadcast %cst_85 : f32 to vector<16x24xf32>
      %85 = arith.cmpf oge, %76, %84 : vector<16x24xf32>
      %86 = arith.mulf %80, %83 : vector<16x24xf32>
      %87 = arith.select %85, %83, %86 : vector<16x24xi1>, vector<16x24xf32>
      %88 = arith.mulf %68, %87 : vector<16x24xf32>
      %c0_86 = arith.constant 0 : index
      %c0_87 = arith.constant 0 : index
      %89 = arith.index_cast %arg11 : i32 to index
      %c0_88 = arith.constant 0 : index
      %90 = vector.load %arg9[%c0_86, %c0_87, %89, %c0_88] : memref<1x16x24x24xf32, #tpu.memory_space<vmem>>, vector<1x16x1x24xf32>
      %91 = vector.shape_cast %90 : vector<1x16x1x24xf32> to vector<16x24xf32>
      %92 = vector.shape_cast %88 : vector<16x24xf32> to vector<1x16x1x24xf32>
      tpu.vector_store %arg9[%c0_86, %c0_87, %89, %c0_88], %92 {strides = array<i32>} : memref<1x16x24x24xf32, #tpu.memory_space<vmem>>, vector<1x16x1x24xf32>,
    }
    return
  }
  func.func @transform_0(%arg0: i32, %arg1: i32) -> (i32, i32, i32, i32) {
    %c0_i32 = arith.constant 0 : i32
    %c0_i32_0 = arith.constant 0 : i32
    %c0_i32_1 = arith.constant 0 : i32
    return %arg0, %c0_i32, %arg1, %c0_i32_0 : i32, i32, i32, i32
  }
  func.func @transform_1(%arg0: i32, %arg1: i32) -> (i32, i32, i32, i32) {
    %c0_i32 = arith.constant 0 : i32
    %c0_i32_0 = arith.constant 0 : i32
    %c0_i32_1 = arith.constant 0 : i32
    %c0_i32_2 = arith.constant 0 : i32
    return %arg0, %c0_i32, %c0_i32_0, %c0_i32_1 : i32, i32, i32, i32
  }
  func.func @transform_2(%arg0: i32, %arg1: i32) -> (i32, i32) {
    %c0_i32 = arith.constant 0 : i32
    %c0_i32_0 = arith.constant 0 : i32
    return %arg1, %c0_i32 : i32, i32
  }
  func.func @transform_3(%arg0: i32, %arg1: i32) -> (i32, i32) {
    %c0_i32 = arith.constant 0 : i32
    %c0_i32_0 = arith.constant 0 : i32
    %c0_i32_1 = arith.constant 0 : i32
    return %c0_i32, %c0_i32_0 : i32, i32
  }
  func.func @transform_4(%arg0: i32, %arg1: i32) -> (i32, i32) {
    %c0_i32 = arith.constant 0 : i32
    %c0_i32_0 = arith.constant 0 : i32
    %c0_i32_1 = arith.constant 0 : i32
    return %c0_i32, %c0_i32_0 : i32, i32
  }
  func.func @transform_5(%arg0: i32, %arg1: i32) -> (i32, i32) {
    %c0_i32 = arith.constant 0 : i32
    %c0_i32_0 = arith.constant 0 : i32
    %c0_i32_1 = arith.constant 0 : i32
    return %c0_i32, %c0_i32_0 : i32, i32
  }
  func.func @transform_6(%arg0: i32, %arg1: i32) -> (i32, i32) {
    %c0_i32 = arith.constant 0 : i32
    %c0_i32_0 = arith.constant 0 : i32
    %c0_i32_1 = arith.constant 0 : i32
    return %c0_i32, %c0_i32_0 : i32, i32
  }
  func.func @transform_7(%arg0: i32, %arg1: i32) -> (i32, i32, i32, i32) {
    %c0_i32 = arith.constant 0 : i32
    %c0_i32_0 = arith.constant 0 : i32
    %c0_i32_1 = arith.constant 0 : i32
    return %arg0, %c0_i32, %arg1, %c0_i32_0 : i32, i32, i32, i32
  }
}

</mosaic_0001>

<bundles_post_ra>
// kernel: esa_forward.5
= control target key start
LH: loop header
LB: loop body
LE: loop exit
PB: predicated region body
PF: predicated region fallthrough
CT: control target
= control target key end

     0   :  { %s647_s6 = smov 0   ;;  %s860_s0 = inlined_call_operand.vmem [shape: f32[2,8,11,22], index: 0, kind: input, shape index: {}]   ;;  %s861_s1 = inlined_call_operand.vmem [shape: f32[2,8,2,10], index: 1, kind: output, shape index: {}]  }
   0x1 LB: > { %s532_s7 = sadd.s32 4294967295, %s625_s6   ;;  %p536_p0 = scmp.ge.s32.totalorder %s625_s6, 1  ;;  %s625_s6 = sphi %s647_s6, %s11_s6  }
   0x2   : > { %p87_p1 = scmp.lt.s32.totalorder %s625_s6, 3 }
   0x4   : > { %p88_p2 = pnand %p536_p0, %p87_p1 }
   0x5   : > { %p107_p3 = scmp.lt.s32.totalorder (!%p88_p2), %s532_s7, 1  ;;  %s665_s16 = smov (!%p88_p2), 0  }
   0x6   : > { %91 = sbr.rel (%p88_p2) target bundleno = 269 (0x10d), region = 24 }
   0xb   : > { %s863_s7 = smov (!%p107_p3, %s532_s7), 1 }
   0xc   : > { %s591_s8 = sshll.u32 %s863_s7, 7  ;;  %s592_s9 = sshll.u32 %s863_s7, 4 }
   0xd   : > { %s658_s12 = scalar_lea.vmem %s860_s0, %s591_s8  ;;  %s663_s15 = scalar_lea.vmem %s861_s1, %s592_s9 }
   0xe LB: >> { %s123_s17 = smul.u32 3, %s629_s16  ;;  %s631_s19 = smov 126   ;;  %vm442_vm0 = vcmask 73728   ;;  %s629_s16 = sphi %s665_s16, %s122_s16  }
   0xf   : >> { %s632_s20 = smov 124   ;;  %s633_s21 = smov 122  }
  0x10   : >> { %s672_s18 = scalar_lea.vmem %s658_s12, %s123_s17  ;;  %s634_s22 = smov 120  }
  0x11   : >> { %v127_v0 = vld [vmem:[%s672_s18 + $0x20] sm:$0x1]  ;;  %v543_v1 = vld [vmem:[%s672_s18 + $0x21] sm:$0x1]  ;;  %v551_v2 = vld [vmem:[%s672_s18 + $0x22] sm:$0x1]  ;;  %s828_s25 = scalar_lea.vmem %s663_s15, %s629_s16 }
  0x12   : >> { %v145_v3 = vmax.f32 %v127_v0, %v543_v1  ;;  %v559_v4 = vld [vmem:[%s672_s18 + $0x23] sm:$0x1]  ;;  %v125_v5 = vld [vmem:[%s672_s18] sm:$0x1]  ;;  %v541_v6 = vld [vmem:[%s672_s18 + $0x1] sm:$0x1] }
  0x13   : >> { %v143_v8 = vmax.f32 %v125_v5, %v541_v6  ;;  %v549_v9 = vld [vmem:[%s672_s18 + $0x2] sm:$0x1]  ;;  %v567_v10 = vld [vmem:[%s672_s18 + $0x24] sm:$0x1]  ;;  %v557_v11 = vld [vmem:[%s672_s18 + $0x3] sm:$0x1] }
  0x14   : >> { %v163_v7 = vmax.f32 %v145_v3, %v551_v2  ;;  %v128_v12 = vld [vmem:[%s672_s18 + $0x30] sm:$0x1]  ;;  %v544_v15 = vld [vmem:[%s672_s18 + $0x31] sm:$0x1]  ;;  %v552_v16 = vld [vmem:[%s672_s18 + $0x32] sm:$0x1] }
  0x15   : >> { %v161_v14 = vmax.f32 %v143_v8, %v549_v9  ;;  %v575_v17 = vld [vmem:[%s672_s18 + $0x25] sm:$0x1]  ;;  %v565_v18 = vld [vmem:[%s672_s18 + $0x4] sm:$0x1]  ;;  %v146_v19 = vmax.f32 %v128_v12, %v544_v15  ;;  %v560_v20 = vld [vmem:[%s672_s18 + $0x33] sm:$0x1] }
  0x16   : >> { %v181_v13 = vmax.f32 %v163_v7, %v559_v4  ;;  %v126_v23 = vld [vmem:[%s672_s18 + $0x10] sm:$0x1]  ;;  %v542_v24 = vld [vmem:[%s672_s18 + $0x11] sm:$0x1]  ;;  %v550_v25 = vld [vmem:[%s672_s18 + $0x12] sm:$0x1] }
  0x17   : >> { %v179_v22 = vmax.f32 %v161_v14, %v557_v11  ;;  %v583_v26 = vld [vmem:[%s672_s18 + $0x26] sm:$0x1]  ;;  %v573_v27 = vld [vmem:[%s672_s18 + $0x5] sm:$0x1]  ;;  %v164_v28 = vmax.f32 %v146_v19, %v552_v16  ;;  %v568_v29 = vld [vmem:[%s672_s18 + $0x34] sm:$0x1]  ;;  %v144_v30 = vmax.f32 %v126_v23, %v542_v24 }
  0x18   : >> { %v199_v21 = vmax.f32 %v181_v13, %v567_v10  ;;  %v558_v33 = vld [vmem:[%s672_s18 + $0x13] sm:$0x1]  ;;  %v129_v34 = vld [vmem:[%s672_s18 + $0x40] sm:$0x1]  ;;  %v545_v35 = vld [vmem:[%s672_s18 + $0x41] sm:$0x1] }
  0x19   : >> { %v197_v32 = vmax.f32 %v179_v22, %v565_v18  ;;  %v581_v36 = vld [vmem:[%s672_s18 + $0x6] sm:$0x1]  ;;  %v182_v37 = vmax.f32 %v164_v28, %v560_v20  ;;  %v576_v38 = vld [vmem:[%s672_s18 + $0x35] sm:$0x1]  ;;  %v162_v39 = vmax.f32 %v144_v30, %v550_v25  ;;  %v147_v40 = vmax.f32 %v129_v34, %v545_v35  ;;  %v553_v41 = vld [vmem:[%s672_s18 + $0x42] sm:$0x1] }
  0x1a   : >> { %v217_v31 = vmax.f32 %v199_v21, %v575_v17  ;;  %v566_v44 = vld [vmem:[%s672_s18 + $0x14] sm:$0x1]  ;;  %v561_v45 = vld [vmem:[%s672_s18 + $0x43] sm:$0x1]  ;;  %v132_v46 = vld [vmem:[%s672_s18 + $0x70] sm:$0x1] }
  0x1b   : >> { %v215_v43 = vmax.f32 %v197_v32, %v573_v27  ;;  %v200_v47 = vmax.f32 %v182_v37, %v568_v29  ;;  %v584_v48 = vld [vmem:[%s672_s18 + $0x36] sm:$0x1]  ;;  %v180_v49 = vmax.f32 %v162_v39, %v558_v33  ;;  %v165_v50 = vmax.f32 %v147_v40, %v553_v41  ;;  %v548_v51 = vld [vmem:[%s672_s18 + $0x71] sm:$0x1]  ;;  %v556_v52 = vld [vmem:[%s672_s18 + $0x72] sm:$0x1] }
  0x1c   : >> { %v701_v42 = vmax.f32 %v217_v31, %v583_v26  ;;  %v574_v54 = vld [vmem:[%s672_s18 + $0x15] sm:$0x1]  ;;  %v569_v55 = vld [vmem:[%s672_s18 + $0x44] sm:$0x1]  ;;  %v150_v56 = vmax.f32 %v132_v46, %v548_v51  ;;  %v564_v57 = vld [vmem:[%s672_s18 + $0x73] sm:$0x1] }
  0x1d   : >> { %v711_v53 = vmax.f32 %v215_v43, %v581_v36  ;;  %v218_v58 = vmax.f32 %v200_v47, %v576_v38  ;;  %v198_v59 = vmax.f32 %v180_v49, %v566_v44  ;;  %v183_v60 = vmax.f32 %v165_v50, %v561_v45  ;;  %v131_v61 = vld [vmem:[%s672_s18 + $0x60] sm:$0x1]  ;;  %v547_v62 = vld [vmem:[%s672_s18 + $0x61] sm:$0x1]  ;;  %v555_v63 = vld [vmem:[%s672_s18 + $0x62] sm:$0x1] }
  0x1e   : >> { %253 = vrot.lane.b32.xlu1 %v701_v42, %s631_s19  ;;  %v582_v0 = vld [vmem:[%s672_s18 + $0x16] sm:$0x1]  ;;  %v577_v1 = vld [vmem:[%s672_s18 + $0x45] sm:$0x1]  ;;  %v168_v2 = vmax.f32 %v150_v56, %v556_v52  ;;  %v572_v3 = vld [vmem:[%s672_s18 + $0x74] sm:$0x1]  ;;  %v149_v4 = vmax.f32 %v131_v61, %v547_v62 }
  0x1f   : >> { %249 = vrot.lane.b32.xlu0 %v711_v53, %s631_s19  ;;  %v216_v5 = vmax.f32 %v198_v59, %v574_v54  ;;  %v201_v6 = vmax.f32 %v183_v60, %v569_v55  ;;  %v563_v7 = vld [vmem:[%s672_s18 + $0x63] sm:$0x1]  ;;  %v130_v8 = vld [vmem:[%s672_s18 + $0x50] sm:$0x1]  ;;  %v546_v9 = vld [vmem:[%s672_s18 + $0x51] sm:$0x1]  ;;  %v727_v10 = vmax.f32 %v218_v58, %v584_v48 }
  0x20   : >> { %v585_v11 = vld [vmem:[%s672_s18 + $0x46] sm:$0x1]  ;;  %v186_v12 = vmax.f32 %v168_v2, %v564_v57  ;;  %v167_v13 = vmax.f32 %v149_v4, %v555_v63  ;;  %v148_v14 = vmax.f32 %v130_v8, %v546_v9  ;;  %v554_v15 = vld [vmem:[%s672_s18 + $0x52] sm:$0x1]  ;;  %v580_v17 = vld [vmem:[%s672_s18 + $0x75] sm:$0x1] }
  0x21   : >> { %v219_v16 = vmax.f32 %v201_v6, %v577_v1  ;;  %v571_v18 = vld [vmem:[%s672_s18 + $0x64] sm:$0x1]  ;;  %v562_v19 = vld [vmem:[%s672_s18 + $0x53] sm:$0x1]  ;;  %v734_v20 = vmax.f32 %v216_v5, %v582_v0  ;;  %v579_v25 = vld [vmem:[%s672_s18 + $0x65] sm:$0x1] }
  0x22   : >> { %v204_v21 = vmax.f32 %v186_v12, %v572_v3  ;;  %v185_v22 = vmax.f32 %v167_v13, %v563_v7  ;;  %v166_v23 = vmax.f32 %v148_v14, %v554_v15  ;;  %v570_v26 = vld [vmem:[%s672_s18 + $0x54] sm:$0x1]  ;;  %v588_v30 = vld [vmem:[%s672_s18 + $0x76] sm:$0x1]  ;;  %v578_v31 = vld [vmem:[%s672_s18 + $0x55] sm:$0x1] }
  0x23   : >> { %v736_v24 = vmax.f32 %v219_v16, %v585_v11  ;;  %v587_v34 = vld [vmem:[%s672_s18 + $0x66] sm:$0x1]  ;;  %v586_v35 = vld [vmem:[%s672_s18 + $0x56] sm:$0x1]  ;;  %s635_s23 = smov 118   ;;  %s636_s24 = smov 116  }
  0x24   : >> { %v222_v27 = vmax.f32 %v204_v21, %v580_v17  ;;  %v203_v28 = vmax.f32 %v185_v22, %v571_v18  ;;  %v184_v29 = vmax.f32 %v166_v23, %v562_v19  ;;  %s122_s16 = sadd.s32 1, %s629_s16  }
  0x25   : >> { %257 = vrot.lane.b32.xlu2 %v736_v24, %s631_s19  ;;  %p119_p4 = scmp.ge.s32.totalorder %s122_s16, 2  }
  0x26   : >> { %255 = vrot.lane.b32.xlu1 %v727_v10, %s631_s19  ;;  %v221_v32 = vmax.f32 %v203_v28, %v579_v25  ;;  %v202_v33 = vmax.f32 %v184_v29, %v570_v26  ;;  %v750_v36 = vmax.f32 %v222_v27, %v588_v30 }
  0x27   : >> { %251 = vrot.lane.b32.xlu0 %v734_v20, %s631_s19 }
  0x28   : >> { %v220_v37 = vmax.f32 %v202_v33, %v578_v31  ;;  %v752_v38 = vmax.f32 %v221_v32, %v587_v34 }
  0x2a   : >> { %v754_v39 = vmax.f32 %v220_v37, %v586_v35 }
  0x2d   : >> { %259 = vrot.lane.b32.xlu2 %v754_v39, %s631_s19 }
  0x2e   : >> { %263 = vrot.lane.b32.xlu1 %v750_v36, %s631_s19 }
  0x2f   : >> { %261 = vrot.lane.b32.xlu0 %v752_v38, %s631_s19 }
  0x35   : >> { %281 = vrot.lane.b32.xlu2 %v711_v53, %s632_s20 }
  0x36   : >> { %285 = vrot.lane.b32.xlu1 %v701_v42, %s632_s20 }
  0x37   : >> { %283 = vrot.lane.b32.xlu0 %v734_v20, %s632_s20 }
  0x3d   : >> { %287 = vrot.lane.b32.xlu2 %v727_v10, %s632_s20 }
  0x3e   : >> { %291 = vrot.lane.b32.xlu1 %v754_v39, %s632_s20 }
  0x3f   : >> { %289 = vrot.lane.b32.xlu0 %v736_v24, %s632_s20 }
  0x45   : >> { %293 = vrot.lane.b32.xlu2 %v752_v38, %s632_s20 }
  0x46   : >> { %313 = vrot.lane.b32.xlu1 %v711_v53, %s633_s21 }
  0x47   : >> { %295 = vrot.lane.b32.xlu0 %v750_v36, %s632_s20 }
  0x4d   : >> { %315 = vrot.lane.b32.xlu2 %v734_v20, %s633_s21 }
  0x4e   : >> { %319 = vrot.lane.b32.xlu1 %v727_v10, %s633_s21 }
  0x4f   : >> { %317 = vrot.lane.b32.xlu0 %v701_v42, %s633_s21 }
  0x55   : >> { %321 = vrot.lane.b32.xlu2 %v736_v24, %s633_s21 }
  0x56   : >> { %325 = vrot.lane.b32.xlu1 %v752_v38, %s633_s21 }
  0x57   : >> { %323 = vrot.lane.b32.xlu0 %v754_v39, %s633_s21 }
  0x5d   : >> { %327 = vrot.lane.b32.xlu2 %v750_v36, %s633_s21 }
  0x5e   : >> { %347 = vrot.lane.b32.xlu1 %v734_v20, %s634_s22 }
  0x5f   : >> { %345 = vrot.lane.b32.xlu0 %v711_v53, %s634_s22 }
  0x65   : >> { %349 = vrot.lane.b32.xlu2 %v701_v42, %s634_s22 }
  0x66   : >> { %353 = vrot.lane.b32.xlu1 %v736_v24, %s634_s22 }
  0x67   : >> { %351 = vrot.lane.b32.xlu0 %v727_v10, %s634_s22 }
  0x6d   : >> { %355 = vrot.lane.b32.xlu2 %v754_v39, %s634_s22 }
  0x6e   : >> { %359 = vrot.lane.b32.xlu1 %v750_v36, %s634_s22 }
  0x6f   : >> { %357 = vrot.lane.b32.xlu0 %v752_v38, %s634_s22 }
  0x75   : >> { %377 = vrot.lane.b32.xlu2 %v711_v53, %s635_s23 }
  0x76   : >> { %381 = vrot.lane.b32.xlu1 %v701_v42, %s635_s23 }
  0x77   : >> { %379 = vrot.lane.b32.xlu0 %v734_v20, %s635_s23 }
  0x7d   : >> { %383 = vrot.lane.b32.xlu2 %v727_v10, %s635_s23 }
  0x7e   : >> { %387 = vrot.lane.b32.xlu1 %v754_v39, %s635_s23 }
  0x7f   : >> { %385 = vrot.lane.b32.xlu0 %v736_v24, %s635_s23  ;;  %v792_v40 = vpop.permute.xlu2 %257 }
  0x80   : >> { %v277_v27 = vmax.f32 %v736_v24, %v792_v40 }
  0x85   : >> { %389 = vrot.lane.b32.xlu2 %v752_v38, %s635_s23 }
  0x86   : >> { %409 = vrot.lane.b32.xlu1 %v711_v53, %s636_s24 }
  0x87   : >> { %391 = vrot.lane.b32.xlu0 %v750_v36, %s635_s23  ;;  %v260_v41 = vpop.permute.xlu2 %259 }
  0x88   : >> { %v278_v63 = vmax.f32 %v754_v39, %v260_v41 }
  0x8d   : >> { %411 = vrot.lane.b32.xlu2 %v734_v20, %s636_s24 }
  0x8e   : >> { %415 = vrot.lane.b32.xlu1 %v727_v10, %s636_s24 }
  0x8f   : >> { %413 = vrot.lane.b32.xlu0 %v701_v42, %s636_s24  ;;  %v282_v44 = vpop.permute.xlu2 %281 }
  0x90   : >> { %v254_v43 = vpop.permute.xlu1 %253 }
  0x91   : >> { %v250_v45 = vpop.permute.xlu0 %249  ;;  %v275_v58 = vmax.f32 %v701_v42, %v254_v43 }
  0x92   : >> { %v273_v46 = vmax.f32 %v711_v53, %v250_v45 }
  0x94   : >> { %v801_v47 = vmax.f32 %v273_v46, %v282_v44 }
  0x95   : >> { %417 = vrot.lane.b32.xlu2 %v736_v24, %s636_s24 }
  0x96   : >> { %421 = vrot.lane.b32.xlu1 %v752_v38, %s636_s24 }
  0x97   : >> { %419 = vrot.lane.b32.xlu0 %v754_v39, %s636_s24  ;;  %v288_v50 = vpop.permute.xlu2 %287 }
  0x98   : >> { %v256_v48 = vpop.permute.xlu1 %255 }
  0x99   : >> { %v276_v49 = vmax.f32 %v727_v10, %v256_v48  ;;  %v252_v51 = vpop.permute.xlu0 %251 }
  0x9a   : >> { %v274_v19 = vmax.f32 %v734_v20, %v252_v51 }
  0x9b   : >> { %v807_v52 = vmax.f32 %v276_v49, %v288_v50 }
  0x9d   : >> { %423 = vrot.lane.b32.xlu2 %v750_v36, %s636_s24 }
  0x9f   : >> { %v294_v55 = vpop.permute.xlu2 %293 }
  0xa0   : >> { %v264_v54 = vpop.permute.xlu1 %263 }
  0xa1   : >> { %v262_v53 = vpop.permute.xlu0 %261  ;;  %v280_v35 = vmax.f32 %v750_v36, %v264_v54 }
  0xa2   : >> { %v279_v56 = vmax.f32 %v752_v38, %v262_v53 }
  0xa4   : >> { %v811_v57 = vmax.f32 %v279_v56, %v294_v55 }
  0xa7   : >> { %v316_v61 = vpop.permute.xlu2 %315 }
  0xa8   : >> { %v286_v59 = vpop.permute.xlu1 %285 }
  0xa9   : >> { %v814_v60 = vmax.f32 %v275_v58, %v286_v59  ;;  %v284_v62 = vpop.permute.xlu0 %283 }
  0xaa   : >> { %v306_v23 = vmax.f32 %v274_v19, %v284_v62 }
  0xac   : >> { %v338_v25 = vmax.f32 %v306_v23, %v316_v61 }
  0xaf   : >> { %v322_v2 = vpop.permute.xlu2 %321 }
  0xb0   : >> { %v292_v0 = vpop.permute.xlu1 %291 }
  0xb1   : >> { %v817_v1 = vmax.f32 %v278_v63, %v292_v0  ;;  %v290_v3 = vpop.permute.xlu0 %289 }
  0xb2   : >> { %v309_v31 = vmax.f32 %v277_v27, %v290_v3 }
  0xb4   : >> { %v341_v20 = vmax.f32 %v309_v31, %v322_v2 }
  0xb7   : >> { %v328_v5 = vpop.permute.xlu2 %327 }
  0xb8   : >> { %v314_v4 = vpop.permute.xlu1 %313 }
  0xb9   : >> { %v296_v6 = vpop.permute.xlu0 %295  ;;  %v337_v37 = vmax.f32 %v801_v47, %v314_v4 }
  0xba   : >> { %v312_v40 = vmax.f32 %v280_v35, %v296_v6 }
  0xbc   : >> { %v344_v45 = vmax.f32 %v312_v40, %v328_v5 }
  0xbf   : >> { %v350_v8 = vpop.permute.xlu2 %349 }
  0xc0   : >> { %v320_v7 = vpop.permute.xlu1 %319 }
  0xc1   : >> { %v318_v9 = vpop.permute.xlu0 %317  ;;  %v340_v49 = vmax.f32 %v807_v52, %v320_v7 }
  0xc2   : >> { %v339_v54 = vmax.f32 %v814_v60, %v318_v9 }
  0xc4   : >> { %v371_v58 = vmax.f32 %v339_v54, %v350_v8 }
  0xc7   : >> { %v819_v42 = vpop.permute.xlu2 %355 }
  0xc8   : >> { %v326_v10 = vpop.permute.xlu1 %325 }
  0xc9   : >> { %v821_v11 = vpop.permute.xlu0 %323  ;;  %v343_v52 = vmax.f32 %v811_v57, %v326_v10 }
  0xca   : >> { %v342_v60 = vmax.f32 %v817_v1, %v821_v11 }
  0xcc   : >> { %v374_v4 = vmax.f32 %v342_v60, %v819_v42 }
  0xcf   : >> { %v378_v13 = vpop.permute.xlu2 %377 }
  0xd0   : >> { %v348_v12 = vpop.permute.xlu1 %347 }
  0xd1   : >> { %v346_v14 = vpop.permute.xlu0 %345  ;;  %v370_v28 = vmax.f32 %v338_v25, %v348_v12 }
  0xd2   : >> { %v369_v41 = vmax.f32 %v337_v37, %v346_v14 }
  0xd4   : >> { %v401_v46 = vmax.f32 %v369_v41, %v378_v13 }
  0xd7   : >> { %v384_v16 = vpop.permute.xlu2 %383 }
  0xd8   : >> { %v354_v15 = vpop.permute.xlu1 %353 }
  0xd9   : >> { %v352_v17 = vpop.permute.xlu0 %351  ;;  %v373_v24 = vmax.f32 %v341_v20, %v354_v15 }
  0xda   : >> { %v372_v55 = vmax.f32 %v340_v49, %v352_v17 }
  0xdc   : >> { %v404_v59 = vmax.f32 %v372_v55, %v384_v16 }
  0xdf   : >> { %v390_v21 = vpop.permute.xlu2 %389 }
  0xe0   : >> { %v360_v18 = vpop.permute.xlu1 %359 }
  0xe1   : >> { %v358_v22 = vpop.permute.xlu0 %357  ;;  %v376_v50 = vmax.f32 %v344_v45, %v360_v18 }
  0xe2   : >> { %v375_v2 = vmax.f32 %v343_v52, %v358_v22 }
  0xe4   : >> { %v407_v5 = vmax.f32 %v375_v2, %v390_v21 }
  0xe7   : >> { %v412_v29 = vpop.permute.xlu2 %411 }
  0xe8   : >> { %v382_v26 = vpop.permute.xlu1 %381 }
  0xe9   : >> { %v380_v30 = vpop.permute.xlu0 %379  ;;  %v403_v62 = vmax.f32 %v371_v58, %v382_v26 }
  0xea   : >> { %v402_v32 = vmax.f32 %v370_v28, %v380_v30 }
  0xec   : >> { %v434_v33 = vmax.f32 %v402_v32, %v412_v29 }
  0xee   : >> { %444 = vst.msk [vmem:[%s828_s25 + $0x2] sm:$0x1] %vm442_vm0, %v434_v33 }
  0xef   : >> { %v418_v38 = vpop.permute.xlu2 %417 }
  0xf0   : >> { %v388_v34 = vpop.permute.xlu1 %387 }
  0xf1   : >> { %v386_v39 = vpop.permute.xlu0 %385  ;;  %v406_v7 = vmax.f32 %v374_v4, %v388_v34 }
  0xf2   : >> { %v405_v43 = vmax.f32 %v373_v24, %v386_v39 }
  0xf4   : >> { %v437_v44 = vmax.f32 %v405_v43, %v418_v38 }
  0xf6   : >> { %447 = vst.msk [vmem:[%s828_s25 + $0x8] sm:$0x1] %vm442_vm0, %v437_v44 }
  0xf7   : >> { %v424_v47 = vpop.permute.xlu2 %423 }
  0xf8   : >> { %v410_v48 = vpop.permute.xlu1 %409 }
  0xf9   : >> { %v433_v36 = vmax.f32 %v401_v46, %v410_v48  ;;  %v392_v51 = vpop.permute.xlu0 %391 }
  0xfa   : >> { %v408_v53 = vmax.f32 %v376_v50, %v392_v51 }
  0xfb   : >> { %443 = vst.msk [vmem:[%s828_s25] sm:$0x1] %vm442_vm0, %v433_v36 }
  0xfc   : >> { %v440_v56 = vmax.f32 %v408_v53, %v424_v47 }
  0xfe   : >> { %450 = vst.msk [vmem:[%s828_s25 + $0xe] sm:$0x1] %vm442_vm0, %v440_v56 }
 0x100   : >> { %v416_v61 = vpop.permute.xlu1 %415 }
 0x101   : >> { %v436_v63 = vmax.f32 %v404_v59, %v416_v61  ;;  %v414_v0 = vpop.permute.xlu0 %413 }
 0x102   : >> { %v435_v3 = vmax.f32 %v403_v62, %v414_v0 }
 0x103   : >> { %446 = vst.msk [vmem:[%s828_s25 + $0x6] sm:$0x1] %vm442_vm0, %v436_v63 }
 0x104   : >> { %445 = vst.msk [vmem:[%s828_s25 + $0x4] sm:$0x1] %vm442_vm0, %v435_v3 }
 0x108   : >> { %v422_v6 = vpop.permute.xlu1 %421  ;;  %121 = sbr.rel (!%p119_p4) target bundleno = 14 (0xe), region = 69 }
 0x109   : >> { %v439_v8 = vmax.f32 %v407_v5, %v422_v6  ;;  %v420_v57 = vpop.permute.xlu0 %419 }
 0x10a   : >> { %v438_v9 = vmax.f32 %v406_v7, %v420_v57 }
 0x10b   : >> { %449 = vst.msk [vmem:[%s828_s25 + $0xc] sm:$0x1] %vm442_vm0, %v439_v8 }
 0x10c   : >> { %448 = vst.msk [vmem:[%s828_s25 + $0xa] sm:$0x1] %vm442_vm0, %v438_v9 }
 0x10d PF: > { %s11_s6 = sadd.s32 1, %s625_s6  }
 0x10e   : > { %p8_p5 = scmp.ge.s32.totalorder %s11_s6, 4  }
 0x110   :  { %10 = sbr.rel (!%p8_p5) target bundleno = 1 (0x1), region = 80 }

// kernel: esa_forward.4
= control target key start
LH: loop header
LB: loop body
LE: loop exit
PB: predicated region body
PF: predicated region fallthrough
CT: control target
= control target key end

     0   :  { %s787_s12 = smov 0   ;;  %s789_s13 = smov 0   ;;  %s973_s0 = inlined_call_operand.vmem [shape: f32[2,16,24,24], index: 0, kind: input, shape index: {}]   ;;  %s974_s1 = inlined_call_operand.vmem [shape: f32[8,144], index: 1, kind: input, shape index: {}]   ;;  %s975_s2 = inlined_call_operand.vmem [shape: f32[8,1], index: 2, kind: input, shape index: {}]   ;;  %s976_s3 = inlined_call_operand.vmem [shape: f32[2,8,11,22], index: 3, kind: output, shape index: {}]  }
   0x1   :  { %s791_s14 = smov 0  }
   0x2 LB: > { %s25_s15 = sadd.s32 1, %s754_s13  ;;  %p622_p0 = scmp.ge.s32.totalorder %s758_s14, 1  ;;  %s758_s14 = sphi %s791_s14, %s13_s14   ;;  %s754_s13 = sphi %s789_s13, %s978_s13   ;;  %s750_s12 = sphi %s787_s12, %s977_s12  }
   0x3   : > { %p27_p1 = scmp.ge.s32.totalorder %s25_s15, 2  ;;  %p151_p2 = scmp.lt.s32.totalorder %s758_s14, 3 }
   0x5   : > { %s980_s15 = smov (%p27_p1, %s25_s15), 0  ;;  %p152_p3 = pnand %p622_p0, %p151_p2 }
   0x6   : > { %p179_p4 = scmp.lt.s32.totalorder (!%p152_p3), %s750_s12, 1  ;;  %s830_s30 = smov (!%p152_p3), 0  }
   0x7   : > { %155 = sbr.rel (%p152_p3) target bundleno = 323 (0x143), region = 32 }
   0xc   : > { %v808_v0 = vld [vmem:[%s974_s1] sm:$0xff]  ;;  %v813_v1 = vld [vmem:[%s974_s1 + $0x8] sm:$0xff]  ;;  %s982_s12 = smov (!%p179_p4, %s750_s12), 1 }
   0xd   : > { %v818_v2 = vld [vmem:[%s975_s2] sm:$0xff]  ;;  %s665_s22 = smul.u32 384, %s982_s12  ;;  %s664_s23 = sshll.u32 %s982_s12, 7 }
   0xe   : > { %s823_s26 = scalar_lea.vmem %s976_s3, %s664_s23 }
   0xf   : > { %s828_s29 = scalar_lea.vmem %s973_s0, %s665_s22 }
  0x10 LB: >> { %s626_s4 = sshll.u32 %s762_s30, 1  ;;  %vm279_vm0 = vcmask 1041409   ;;  %vm282_vm1 = vcmask 1042434   ;;  %vm285_vm2 = vcmask 1043459   ;;  %vm288_vm3 = vcmask 1044484   ;;  %s764_s6 = smov 127   ;;  %s762_s30 = sphi %s830_s30, %s204_s30  }
  0x11   : >> { %s837_s5 = scalar_lea.vmem %s828_s29, %s626_s4  ;;  %vm291_vm4 = vcmask 1045509   ;;  %vm294_vm5 = vcmask 1046534   ;;  %vm297_vm6 = vcmask 1047559   ;;  %s765_s7 = smov 126   ;;  %vm448_vm7 = vcmask 130048  }
  0x12   : >> { %v646_v3 = vld [vmem:[%s837_s5 + $0x1a] sm:$0x1]  ;;  %v647_v4 = vld [vmem:[%s837_s5 + $0x32] sm:$0x1]  ;;  %v648_v5 = vld [vmem:[%s837_s5 + $0x4a] sm:$0x1]  ;;  %s507_s8 = scalar_lea.vmem %s823_s26, %s762_s30 }
  0x13   : >> { %v645_v6 = vld [vmem:[%s837_s5 + $0x2] sm:$0x1]  ;;  %v650_v8 = vld [vmem:[%s837_s5 + $0x7a] sm:$0x1]  ;;  %v651_v9 = vld [vmem:[%s837_s5 + $0x92] sm:$0x1] }
  0x14   : >> { %v649_v7 = vld [vmem:[%s837_s5 + $0x62] sm:$0x1]  ;;  %v652_v10 = vld [vmem:[%s837_s5 + $0xaa] sm:$0x1]  ;;  %v654_v12 = vld [vmem:[%s837_s5 + $0xda] sm:$0x1] }
  0x15   : >> { %v653_v11 = vld [vmem:[%s837_s5 + $0xc2] sm:$0x1]  ;;  %v655_v13 = vld [vmem:[%s837_s5 + $0xf2] sm:$0x1]  ;;  %v656_v14 = vld [vmem:[%s837_s5 + $0x10a] sm:$0x1] }
  0x16   : >> { %v657_v15 = vld [vmem:[%s837_s5 + $0x122] sm:$0x1]  ;;  %v658_v16 = vld [vmem:[%s837_s5 + $0x13a] sm:$0x1]  ;;  %v659_v17 = vld [vmem:[%s837_s5 + $0x152] sm:$0x1] }
  0x17   : >> { %v401_v18 = vrot.slane %v646_v3, 7  ;;  %v403_v19 = vrot.slane %v647_v4, 6  ;;  %v405_v20 = vrot.slane %v648_v5, 5  ;;  %v660_v21 = vld [vmem:[%s837_s5 + $0x16a] sm:$0x1]  ;;  %v407_v22 = vrot.slane %v649_v7, 4 }
  0x18   : >> { %v409_v23 = vrot.slane %v650_v8, 3  ;;  %v411_v24 = vrot.slane %v651_v9, 2  ;;  %v415_v25 = vrot.slane %v654_v12, 7  ;;  %v417_v27 = vrot.slane %v655_v13, 6  ;;  %v629_v30 = vld [vmem:[%s837_s5 + $0x19] sm:$0x1] }
  0x19   : >> { %v402_v26 = vsel %vm279_vm0, %v401_v18, %v645_v6  ;;  %v419_v28 = vrot.slane %v656_v14, 5  ;;  %v421_v29 = vrot.slane %v657_v15, 4  ;;  %v413_v32 = vrot.slane %v652_v10, 1  ;;  %v628_v38 = vld [vmem:[%s837_s5 + $0x1] sm:$0x1]  ;;  %s204_s30 = sadd.s32 1, %s762_s30  }
  0x1a   : >> { %v404_v31 = vsel %vm282_vm1, %v403_v19, %v402_v26  ;;  %v416_v33 = vsel %vm279_vm0, %v415_v25, %v653_v11  ;;  %v423_v34 = vrot.slane %v658_v16, 3  ;;  %v425_v37 = vrot.slane %v659_v17, 2  ;;  %v630_v39 = vld [vmem:[%s837_s5 + $0x31] sm:$0x1]  ;;  %v631_v44 = vld [vmem:[%s837_s5 + $0x49] sm:$0x1] }
  0x1b   : >> { %v406_v35 = vsel %vm285_vm2, %v405_v20, %v404_v31  ;;  %v418_v36 = vsel %vm282_vm1, %v417_v27, %v416_v33  ;;  %v343_v40 = vrot.slane %v629_v30, 7  ;;  %v427_v43 = vrot.slane %v660_v21, 1  ;;  %v632_v45 = vld [vmem:[%s837_s5 + $0x61] sm:$0x1]  ;;  %v633_v48 = vld [vmem:[%s837_s5 + $0x79] sm:$0x1] }
  0x1c   : >> { %v408_v41 = vsel %vm288_vm3, %v407_v22, %v406_v35  ;;  %v420_v42 = vsel %vm285_vm2, %v419_v28, %v418_v36  ;;  %v634_v49 = vld [vmem:[%s837_s5 + $0x91] sm:$0x1]  ;;  %v635_v50 = vld [vmem:[%s837_s5 + $0xa9] sm:$0x1]  ;;  %v636_v53 = vld [vmem:[%s837_s5 + $0xc1] sm:$0x1] }
  0x1d   : >> { %v410_v46 = vsel %vm291_vm4, %v409_v23, %v408_v41  ;;  %v422_v47 = vsel %vm288_vm3, %v421_v29, %v420_v42  ;;  %v637_v54 = vld [vmem:[%s837_s5 + $0xd9] sm:$0x1]  ;;  %v638_v55 = vld [vmem:[%s837_s5 + $0xf1] sm:$0x1]  ;;  %v639_v56 = vld [vmem:[%s837_s5 + $0x109] sm:$0x1]  ;;  %v344_v57 = vsel %vm279_vm0, %v343_v40, %v628_v38 }
  0x1e   : >> { %v412_v51 = vsel %vm294_vm5, %v411_v24, %v410_v46  ;;  %v424_v52 = vsel %vm291_vm4, %v423_v34, %v422_v47  ;;  %v640_v60 = vld [vmem:[%s837_s5 + $0x121] sm:$0x1]  ;;  %v641_v61 = vld [vmem:[%s837_s5 + $0x139] sm:$0x1]  ;;  %v345_v62 = vrot.slane %v630_v39, 6  ;;  %v347_v63 = vrot.slane %v631_v44, 5 }
  0x1f   : >> { %v880_v58 = vsel %vm297_vm6, %v413_v32, %v412_v51  ;;  %v426_v59 = vsel %vm294_vm5, %v425_v37, %v424_v52  ;;  %v642_v4 = vld [vmem:[%s837_s5 + $0x151] sm:$0x1]  ;;  %v349_v5 = vrot.slane %v632_v45, 4  ;;  %v351_v6 = vrot.slane %v633_v48, 3  ;;  %v643_v9 = vld [vmem:[%s837_s5 + $0x169] sm:$0x1] }
  0x20   : >> { %v886_v3 = vsel %vm297_vm6, %v427_v43, %v426_v59  ;;  %v353_v7 = vrot.slane %v634_v49, 2  ;;  %v346_v10 = vsel %vm282_vm1, %v345_v62, %v344_v57  ;;  %v355_v11 = vrot.slane %v635_v50, 1  ;;  %v211_v13 = vld [vmem:[%s837_s5 + $0x18] sm:$0x1]  ;;  %v210_v18 = vld [vmem:[%s837_s5] sm:$0x1] }
  0x21   : >> { %v891_v8 = vpack.i.bf16 %v880_v58, %v886_v3  ;;  %v357_v12 = vrot.slane %v637_v54, 7  ;;  %v348_v14 = vsel %vm285_vm2, %v347_v63, %v346_v10  ;;  %v359_v15 = vrot.slane %v638_v55, 6  ;;  %v212_v22 = vld [vmem:[%s837_s5 + $0x30] sm:$0x1]  ;;  %v213_v23 = vld [vmem:[%s837_s5 + $0x48] sm:$0x1] }
  0x22   : >> { %v361_v16 = vrot.slane %v639_v56, 5  ;;  %v363_v17 = vrot.slane %v640_v60, 4  ;;  %v350_v19 = vsel %vm288_vm3, %v349_v5, %v348_v14  ;;  %v365_v21 = vrot.slane %v641_v61, 3  ;;  %v214_v27 = vld [vmem:[%s837_s5 + $0x60] sm:$0x1]  ;;  %p203_p5 = scmp.ge.s32.totalorder %s204_s30, 11 }
  0x23   : >> { %702 = vrot.lane.b32.xlu0 %v891_v8, %s764_s6  ;;  %v358_v20 = vsel %vm279_vm0, %v357_v12, %v636_v53  ;;  %v352_v24 = vsel %vm291_vm4, %v351_v6, %v350_v19  ;;  %v367_v26 = vrot.slane %v642_v4, 2  ;;  %v215_v28 = vld [vmem:[%s837_s5 + $0x78] sm:$0x1]  ;;  %v278_v29 = vrot.slane %v211_v13, 7  ;;  %v216_v33 = vld [vmem:[%s837_s5 + $0x90] sm:$0x1] }
  0x24   : >> { %v360_v25 = vsel %vm282_vm1, %v359_v15, %v358_v20  ;;  %v354_v30 = vsel %vm294_vm5, %v353_v7, %v352_v24  ;;  %v369_v32 = vrot.slane %v643_v9, 1  ;;  %v217_v34 = vld [vmem:[%s837_s5 + $0xa8] sm:$0x1]  ;;  %v218_v37 = vld [vmem:[%s837_s5 + $0xc0] sm:$0x1]  ;;  %v281_v44 = vrot.slane %v212_v22, 6 }
  0x25   : >> { %v362_v31 = vsel %vm285_vm2, %v361_v16, %v360_v25  ;;  %v913_v35 = vsel %vm297_vm6, %v355_v11, %v354_v30  ;;  %v219_v38 = vld [vmem:[%s837_s5 + $0xd8] sm:$0x1]  ;;  %v220_v39 = vld [vmem:[%s837_s5 + $0xf0] sm:$0x1]  ;;  %v221_v40 = vld [vmem:[%s837_s5 + $0x108] sm:$0x1]  ;;  %v280_v41 = vsel %vm279_vm0, %v278_v29, %v210_v18 }
  0x26   : >> { %v364_v36 = vsel %vm288_vm3, %v363_v17, %v362_v31  ;;  %v222_v43 = vld [vmem:[%s837_s5 + $0x120] sm:$0x1]  ;;  %v284_v45 = vrot.slane %v213_v23, 5  ;;  %v287_v46 = vrot.slane %v214_v27, 4  ;;  %v223_v48 = vld [vmem:[%s837_s5 + $0x138] sm:$0x1]  ;;  %v283_v54 = vsel %vm282_vm1, %v281_v44, %v280_v41 }
  0x27   : >> { %v366_v42 = vsel %vm291_vm4, %v365_v21, %v364_v36  ;;  %v290_v49 = vrot.slane %v215_v28, 3  ;;  %v293_v50 = vrot.slane %v216_v33, 2  ;;  %v296_v51 = vrot.slane %v217_v34, 1  ;;  %v224_v53 = vld [vmem:[%s837_s5 + $0x150] sm:$0x1] }
  0x28   : >> { %v368_v47 = vsel %vm294_vm5, %v367_v26, %v366_v42  ;;  %v299_v55 = vrot.slane %v219_v38, 7  ;;  %v301_v56 = vrot.slane %v220_v39, 6  ;;  %v225_v59 = vld [vmem:[%s837_s5 + $0x168] sm:$0x1]  ;;  %v286_v60 = vsel %vm285_vm2, %v284_v45, %v283_v54 }
  0x29   : >> { %v370_v52 = vsel %vm297_vm6, %v369_v32, %v368_v47  ;;  %v303_v61 = vrot.slane %v221_v40, 5  ;;  %v289_v62 = vsel %vm288_vm3, %v287_v46, %v286_v60  ;;  %v305_v4 = vrot.slane %v222_v43, 4 }
  0x2a   : >> { %v706_v57 = vpack.i.bf16 %v913_v35, %v370_v52  ;;  %v300_v63 = vsel %vm279_vm0, %v299_v55, %v218_v37  ;;  %v307_v5 = vrot.slane %v223_v48, 3  ;;  %v292_v6 = vsel %vm291_vm4, %v290_v49, %v289_v62 }
  0x2b   : >> { %v302_v7 = vsel %vm282_vm1, %v301_v56, %v300_v63  ;;  %v309_v9 = vrot.slane %v224_v53, 2  ;;  %v295_v10 = vsel %vm294_vm5, %v293_v50, %v292_v6  ;;  %v311_v12 = vrot.slane %v225_v59, 1 }
  0x2c   : >> { %707 = vrot.lane.b32.xlu0 %v706_v57, %s765_s7  ;;  %712 = vrot.lane.b32.xlu1 %v706_v57, %s764_s6  ;;  %v304_v11 = vsel %vm285_vm2, %v303_v61, %v302_v7  ;;  %v298_v14 = vsel %vm297_vm6, %v296_v51, %v295_v10  ;;  %v766_v26 = vmov 0   ;;  %vm508_vm8 = vcmask 172032  }
  0x2d   : >> { %v306_v13 = vsel %vm288_vm3, %v305_v4, %v304_v11  ;;  %731 = vset.pattern.permute.xlu0 %v766_v26 }
  0x2e   : >> { %v308_v15 = vsel %vm291_vm4, %v307_v5, %v306_v13 }
  0x2f   : >> { %v310_v16 = vsel %vm294_vm5, %v309_v9, %v308_v15 }
  0x30   : >> { %v312_v17 = vsel %vm297_vm6, %v311_v12, %v310_v16 }
  0x31   : >> { %v716_v18 = vpack.i.bf16 %v298_v14, %v312_v17 }
  0x33   : >> { %722 = vrot.lane.b32.xlu2 %v716_v18, %s764_s6 }
  0x34   : >> { %717 = vrot.lane.b32.xlu1 %v716_v18, %s765_s7  ;;  %445 = vperm.xlu0 %731, %v818_v2  }
  0x3b   : >> { %727 = vrot.lane.b32.xlu2 %v891_v8, %s765_s7 }
  0x8d   : >> { %v723_v19 = vpop.permute.xlu2 %722 }
  0x8e   : >> { %v725_v34 = vunpack.i.h.bf16 %v723_v19 }
  0x95   : >> { %v703_v20 = vpop.permute.xlu0 %702  ;;  %v728_v22 = vpop.permute.xlu2 %727 }
  0x96   : >> { %v704_v21 = vunpack.i.l.bf16 %v703_v20  ;;  %v730_v23 = vunpack.i.h.bf16 %v728_v22  ;;  %v729_v24 = vunpack.i.l.bf16 %v728_v22  ;;  %v705_v25 = vunpack.i.h.bf16 %v703_v20 }
  0x98   : >> { %452 = vmatpush.msra.mxu0 %v704_v21  ;;  %486 = vmatpush.msra.mxu1 %v729_v24 }
  0x9a   : >> { %453 = vmatpush.msra.mxu0 %v705_v25  ;;  %487 = vmatpush.msra.mxu1 %v730_v23 }
  0x9b   : >> { %661 = vmatmul.msk.f32.vlgmr.msra.gmra.mxu1 %vm448_vm7, %v813_v1 }
  0x9c   : >> { %454 = vmatpush.msra.mxu0 %v886_v3 }
  0x9e   : >> { %v708_v8 = vpop.permute.xlu0 %707  ;;  %455 = vmatpush.msra.mxu0 %v880_v58  ;;  %v713_v27 = vpop.permute.xlu1 %712  ;;  %v724_v58 = vunpack.i.l.bf16 %v723_v19 }
  0x9f   : >> { %v709_v28 = vunpack.i.l.bf16 %v708_v8  ;;  %v710_v29 = vunpack.i.h.bf16 %v708_v8  ;;  %v714_v30 = vunpack.i.l.bf16 %v713_v27  ;;  %v715_v31 = vunpack.i.h.bf16 %v713_v27 }
  0xa1   : >> { %456 = vmatpush.msra.mxu0 %v709_v28 }
  0xa3   : >> { %457 = vmatpush.msra.mxu0 %v710_v29 }
  0xa5   : >> { %458 = vmatpush.msra.mxu0 %v714_v30 }
  0xa6   : >> { %v718_v32 = vpop.permute.xlu1 %717  ;;  %v446_v36 = vpop.permute.xlu0 %445 }
  0xa7   : >> { %459 = vmatpush.msra.mxu0 %v715_v31  ;;  %v719_v33 = vunpack.i.l.bf16 %v718_v32  ;;  %v720_v3 = vunpack.i.h.bf16 %v718_v32 }
  0xa9   : >> { %460 = vmatpush.msra.mxu0 %v370_v52 }
  0xab   : >> { %461 = vmatpush.msra.mxu0 %v913_v35 }
  0xad   : >> { %462 = vmatpush.msra.mxu0 %v719_v33 }
  0xaf   : >> { %463 = vmatpush.msra.mxu0 %v720_v3 }
  0xb1   : >> { %464 = vmatpush.msra.mxu0 %v724_v58 }
  0xb3   : >> { %465 = vmatpush.msra.mxu0 %v725_v34 }
  0xb5   : >> { %466 = vmatpush.msra.mxu0 %v312_v17 }
  0xb7   : >> { %467 = vmatpush.msra.mxu0 %v298_v14 }
  0xb8   : >> { %468 = vmatmul.f32.vlgmr.msra.gmra.mxu0 %v808_v0 }
 0x118   : >> { %v489_v38 = vpop.f32.mrf.mxu1 }
 0x135   : >> { %v469_v37 = vpop.f32.mrf.mxu0 }
 0x136   : >> { %v470_v39 = vadd.f32 %v469_v37, %v446_v36 }
 0x138   : >> { %v490_v40 = vadd.f32 %v489_v38, %v470_v39 }
 0x13a   : >> { %v493_v41 = vrot.slane %v490_v40, 1  ;;  %v494_v35 = vrot.slane %v490_v40, 2  ;;  %v495_v42 = vrot.slane %v490_v40, 3  ;;  %509 = vst.msk [vmem:[%s507_s8] sm:$0x1] %vm508_vm8, %v490_v40  ;;  %v496_v43 = vrot.slane %v490_v40, 4 }
 0x13b   : >> { %v497_v44 = vrot.slane %v490_v40, 5  ;;  %v498_v45 = vrot.slane %v490_v40, 6  ;;  %v499_v46 = vrot.slane %v490_v40, 7 }
 0x13c   : >> { %510 = vst.msk [vmem:[%s507_s8 + $0x10] sm:$0x1] %vm508_vm8, %v493_v41 }
 0x13d   : >> { %511 = vst.msk [vmem:[%s507_s8 + $0x20] sm:$0x1] %vm508_vm8, %v494_v35 }
 0x13e   : >> { %512 = vst.msk [vmem:[%s507_s8 + $0x30] sm:$0x1] %vm508_vm8, %v495_v42  ;;  %206 = sbr.rel (!%p203_p5) target bundleno = 16 (0x10), region = 73 }
 0x13f   : >> { %513 = vst.msk [vmem:[%s507_s8 + $0x40] sm:$0x1] %vm508_vm8, %v496_v43 }
 0x140   : >> { %514 = vst.msk [vmem:[%s507_s8 + $0x50] sm:$0x1] %vm508_vm8, %v497_v44 }
 0x141   : >> { %515 = vst.msk [vmem:[%s507_s8 + $0x60] sm:$0x1] %vm508_vm8, %v498_v45 }
 0x142   : >> { %516 = vst.msk [vmem:[%s507_s8 + $0x70] sm:$0x1] %vm508_vm8, %v499_v46 }
 0x143 PF: > { %s13_s14 = sadd.s32 1, %s758_s14   ;;  %s977_s12 = smov %s754_s13 }
 0x144   : > { %p10_p6 = scmp.ge.s32.totalorder %s13_s14, 4   ;;  %s978_s13 = smov %s980_s15 }
 0x146   :  { %12 = sbr.rel (!%p10_p6) target bundleno = 2 (0x2), region = 84 }

// kernel: esa_forward.6
= control target key start
LH: loop header
LB: loop body
LE: loop exit
PB: predicated region body
PF: predicated region fallthrough
CT: control target
= control target key end

     0   :  { %s596_s12 = smov 0   ;;  %s598_s13 = smov 0   ;;  %s712_s0 = inlined_call_operand.vmem [shape: f32[2,8,4,4], index: 0, kind: input, shape index: {}]   ;;  %s713_s1 = inlined_call_operand.vmem [shape: f32[8,72], index: 1, kind: input, shape index: {}]   ;;  %s714_s2 = inlined_call_operand.vmem [shape: f32[8,1], index: 2, kind: input, shape index: {}]   ;;  %s715_s3 = inlined_call_operand.vmem [shape: f32[2,8,2,2], index: 3, kind: output, shape index: {}]  }
   0x1   :  { %s600_s14 = smov 0  }
   0x2 LB: > { %s25_s15 = sadd.s32 1, %s563_s13  ;;  %p479_p0 = scmp.ge.s32.totalorder %s567_s14, 1  ;;  %s567_s14 = sphi %s600_s14, %s13_s14   ;;  %s563_s13 = sphi %s598_s13, %s717_s13   ;;  %s559_s12 = sphi %s596_s12, %s716_s12  }
   0x3   : > { %p27_p1 = scmp.ge.s32.totalorder %s25_s15, 2  ;;  %p151_p2 = scmp.lt.s32.totalorder %s567_s14, 3 }
   0x5   : > { %s719_s15 = smov (%p27_p1, %s25_s15), 0  ;;  %p152_p3 = pnand %p479_p0, %p151_p2 }
   0x6   : > { %p178_p4 = scmp.lt.s32.totalorder (!%p152_p3), %s559_s12, 1  ;;  %s634_s28 = smov (!%p152_p3), 0  }
   0x7   : > { %155 = sbr.rel (%p152_p3) target bundleno = 303 (0x12f), region = 32 }
   0xc   : > { %v617_v0 = vld [vmem:[%s713_s1] sm:$0xff]  ;;  %s721_s12 = smov (!%p178_p4, %s559_s12), 1 }
   0xd   : > { %v622_v1 = vld [vmem:[%s714_s2] sm:$0xff]  ;;  %s503_s20 = sshll.u32 %s721_s12, 5  ;;  %s504_s21 = sshll.u32 %s721_s12, 4 }
   0xe   : > { %s627_s24 = scalar_lea.vmem %s712_s0, %s503_s20  ;;  %s632_s27 = scalar_lea.vmem %s715_s3, %s504_s21 }
   0xf LB: >> { %vm242_vm0 = vcmask 1041409   ;;  %vm245_vm1 = vcmask 1042434   ;;  %s641_s29 = scalar_lea.vmem %s627_s24, %s571_s28  ;;  %vm248_vm2 = vcmask 1043459   ;;  %vm251_vm3 = vcmask 1044484   ;;  %s573_s30 = smov 126   ;;  %s571_s28 = sphi %s634_s28, %s200_s28  }
  0x10   : >> { %vm254_vm4 = vcmask 1045509   ;;  %vm257_vm5 = vcmask 1046534   ;;  %v492_v2 = vld [vmem:[%s641_s29 + $0x2] sm:$0x1]  ;;  %v493_v3 = vld [vmem:[%s641_s29 + $0x6] sm:$0x1]  ;;  %s371_s5 = scalar_lea.vmem %s632_s27, %s571_s28 }
  0x11   : >> { %v494_v4 = vld [vmem:[%s641_s29 + $0xa] sm:$0x1]  ;;  %v495_v5 = vld [vmem:[%s641_s29 + $0xe] sm:$0x1]  ;;  %v496_v6 = vld [vmem:[%s641_s29 + $0x12] sm:$0x1] }
  0x12   : >> { %v497_v7 = vld [vmem:[%s641_s29 + $0x16] sm:$0x1]  ;;  %v498_v8 = vld [vmem:[%s641_s29 + $0x1a] sm:$0x1]  ;;  %v499_v9 = vld [vmem:[%s641_s29 + $0x1e] sm:$0x1] }
  0x13   : >> { %v306_v10 = vrot.slane %v493_v3, 7  ;;  %v308_v11 = vrot.slane %v494_v4, 6  ;;  %vm260_vm6 = vcmask 1047559   ;;  %v310_v12 = vrot.slane %v495_v5, 5  ;;  %v484_v15 = vld [vmem:[%s641_s29 + $0x1] sm:$0x1] }
  0x14   : >> { %v312_v13 = vrot.slane %v496_v6, 4  ;;  %v314_v14 = vrot.slane %v497_v7, 3  ;;  %v316_v17 = vrot.slane %v498_v8, 2  ;;  %v318_v18 = vrot.slane %v499_v9, 1  ;;  %v485_v19 = vld [vmem:[%s641_s29 + $0x5] sm:$0x1] }
  0x15   : >> { %v307_v16 = vsel %vm242_vm0, %v306_v10, %v492_v2  ;;  %v486_v20 = vld [vmem:[%s641_s29 + $0x9] sm:$0x1]  ;;  %v487_v22 = vld [vmem:[%s641_s29 + $0xd] sm:$0x1]  ;;  %v488_v23 = vld [vmem:[%s641_s29 + $0x11] sm:$0x1] }
  0x16   : >> { %v309_v21 = vsel %vm245_vm1, %v308_v11, %v307_v16  ;;  %v489_v24 = vld [vmem:[%s641_s29 + $0x15] sm:$0x1]  ;;  %v490_v26 = vld [vmem:[%s641_s29 + $0x19] sm:$0x1]  ;;  %v491_v27 = vld [vmem:[%s641_s29 + $0x1d] sm:$0x1] }
  0x17   : >> { %v311_v25 = vsel %vm248_vm2, %v310_v12, %v309_v21  ;;  %v277_v28 = vrot.slane %v485_v19, 7  ;;  %v279_v29 = vrot.slane %v486_v20, 6  ;;  %v281_v31 = vrot.slane %v487_v22, 5  ;;  %v205_v34 = vld [vmem:[%s641_s29] sm:$0x1]  ;;  %s574_s4 = smov 127  }
  0x18   : >> { %v313_v30 = vsel %vm251_vm3, %v312_v13, %v311_v25  ;;  %v283_v32 = vrot.slane %v488_v23, 4  ;;  %v285_v33 = vrot.slane %v489_v24, 3  ;;  %v287_v37 = vrot.slane %v490_v26, 2  ;;  %v206_v39 = vld [vmem:[%s641_s29 + $0x4] sm:$0x1]  ;;  %s200_s28 = sadd.s32 1, %s571_s28  }
  0x19   : >> { %v315_v35 = vsel %vm254_vm4, %v314_v14, %v313_v30  ;;  %v278_v36 = vsel %vm242_vm0, %v277_v28, %v484_v15  ;;  %v289_v38 = vrot.slane %v491_v27, 1  ;;  %v207_v40 = vld [vmem:[%s641_s29 + $0x8] sm:$0x1]  ;;  %v208_v43 = vld [vmem:[%s641_s29 + $0xc] sm:$0x1]  ;;  %v241_v49 = vrot.slane %v206_v39, 7 }
  0x1a   : >> { %v317_v41 = vsel %vm257_vm5, %v316_v17, %v315_v35  ;;  %v280_v42 = vsel %vm245_vm1, %v279_v29, %v278_v36  ;;  %v209_v44 = vld [vmem:[%s641_s29 + $0x10] sm:$0x1]  ;;  %v210_v45 = vld [vmem:[%s641_s29 + $0x14] sm:$0x1]  ;;  %v211_v48 = vld [vmem:[%s641_s29 + $0x18] sm:$0x1] }
  0x1b   : >> { %v319_v46 = vsel %vm260_vm6, %v318_v18, %v317_v41  ;;  %v282_v47 = vsel %vm248_vm2, %v281_v31, %v280_v42  ;;  %v244_v50 = vrot.slane %v207_v40, 6  ;;  %v212_v52 = vld [vmem:[%s641_s29 + $0x1c] sm:$0x1]  ;;  %v247_v53 = vrot.slane %v208_v43, 5  ;;  %p199_p5 = scmp.ge.s32.totalorder %s200_s28, 2 }
  0x1c   : >> { %324 = vrot.lane.b32.xlu0 %v319_v46, %s573_s30  ;;  %v284_v51 = vsel %vm251_vm3, %v283_v32, %v282_v47  ;;  %v250_v54 = vrot.slane %v209_v44, 4  ;;  %v243_v56 = vsel %vm242_vm0, %v241_v49, %v205_v34  ;;  %v253_v57 = vrot.slane %v210_v45, 3 }
  0x1d   : >> { %v286_v55 = vsel %vm254_vm4, %v285_v33, %v284_v51  ;;  %v246_v59 = vsel %vm245_vm1, %v244_v50, %v243_v56  ;;  %v256_v60 = vrot.slane %v211_v48, 2  ;;  %v259_v63 = vrot.slane %v212_v52, 1 }
  0x1e   : >> { %v288_v58 = vsel %vm257_vm5, %v287_v37, %v286_v55  ;;  %v249_v62 = vsel %vm248_vm2, %v247_v53, %v246_v59  ;;  %v575_v6 = vmov 0   ;;  %vm332_vm7 = vcmask 588800  }
  0x1f   : >> { %v290_v61 = vsel %vm260_vm6, %v289_v38, %v288_v58  ;;  %v252_v2 = vsel %vm251_vm3, %v250_v54, %v249_v62  ;;  %540 = vset.pattern.permute.xlu0 %v575_v6  ;;  %vm372_vm8 = vcmask 8192  }
  0x20   : >> { %295 = vrot.lane.b32.xlu1 %v290_v61, %s573_s30  ;;  %v255_v3 = vsel %vm254_vm4, %v253_v57, %v252_v2 }
  0x21   : >> { %v258_v4 = vsel %vm257_vm5, %v256_v60, %v255_v3 }
  0x22   : >> { %v261_v5 = vsel %vm260_vm6, %v259_v63, %v258_v4 }
  0x23   : >> { %266 = vrot.lane.b32.xlu2 %v261_v5, %s573_s30 }
  0x24   : >> { %321 = vrot.lane.b32.xlu0 %v319_v46, %s574_s4 }
  0x28   : >> { %292 = vrot.lane.b32.xlu1 %v290_v61, %s574_s4 }
  0x2b   : >> { %263 = vrot.lane.b32.xlu2 %v261_v5, %s574_s4 }
  0x2c   : >> { %329 = vperm.xlu0 %540, %v622_v1  }
  0x7d   : >> { %v267_v10 = vpop.permute.xlu2 %266 }
  0x85   : >> { %v264_v12 = vpop.permute.xlu2 %263 }
  0x8e   : >> { %v325_v7 = vpop.permute.xlu0 %324 }
  0x8f   : >> { %343 = vmatpush.msra.mxu0 %v325_v7 }
  0x92   : >> { %v296_v8 = vpop.permute.xlu1 %295 }
  0x96   : >> { %v322_v9 = vpop.permute.xlu0 %321 }
  0x97   : >> { %344 = vmatpush.msra.mxu0 %v322_v9 }
  0x99   : >> { %345 = vmatpush.msra.mxu0 %v319_v46 }
  0x9a   : >> { %v293_v11 = vpop.permute.xlu1 %292 }
  0x9b   : >> { %346 = vmatpush.msra.mxu0 %v296_v8 }
  0x9d   : >> { %347 = vmatpush.msra.mxu0 %v293_v11 }
  0x9e   : >> { %v330_v13 = vpop.permute.xlu0 %329 }
  0x9f   : >> { %348 = vmatpush.msra.mxu0 %v290_v61 }
  0xa1   : >> { %349 = vmatpush.msra.mxu0 %v267_v10 }
  0xa3   : >> { %350 = vmatpush.msra.mxu0 %v264_v12 }
  0xa5   : >> { %351 = vmatpush.msra.mxu0 %v261_v5 }
  0xa6   : >> { %500 = vmatmul.msk.f32.vlgmr.msra.gmra.mxu0 %vm332_vm7, %v617_v0 }
 0x123   : >> { %v353_v14 = vpop.f32.mrf.mxu0 }
 0x124   : >> { %v354_v15 = vadd.f32 %v353_v14, %v330_v13 }
 0x126   : >> { %v357_v16 = vrot.slane %v354_v15, 1  ;;  %v358_v17 = vrot.slane %v354_v15, 2  ;;  %v359_v18 = vrot.slane %v354_v15, 3  ;;  %373 = vst.msk [vmem:[%s371_s5] sm:$0x1] %vm372_vm8, %v354_v15  ;;  %v360_v19 = vrot.slane %v354_v15, 4 }
 0x127   : >> { %v361_v20 = vrot.slane %v354_v15, 5  ;;  %v362_v21 = vrot.slane %v354_v15, 6  ;;  %v363_v22 = vrot.slane %v354_v15, 7 }
 0x128   : >> { %374 = vst.msk [vmem:[%s371_s5 + $0x2] sm:$0x1] %vm372_vm8, %v357_v16 }
 0x129   : >> { %375 = vst.msk [vmem:[%s371_s5 + $0x4] sm:$0x1] %vm372_vm8, %v358_v17 }
 0x12a   : >> { %376 = vst.msk [vmem:[%s371_s5 + $0x6] sm:$0x1] %vm372_vm8, %v359_v18  ;;  %202 = sbr.rel (!%p199_p5) target bundleno = 15 (0xf), region = 73 }
 0x12b   : >> { %377 = vst.msk [vmem:[%s371_s5 + $0x8] sm:$0x1] %vm372_vm8, %v360_v19 }
 0x12c   : >> { %378 = vst.msk [vmem:[%s371_s5 + $0xa] sm:$0x1] %vm372_vm8, %v361_v20 }
 0x12d   : >> { %379 = vst.msk [vmem:[%s371_s5 + $0xc] sm:$0x1] %vm372_vm8, %v362_v21 }
 0x12e   : >> { %380 = vst.msk [vmem:[%s371_s5 + $0xe] sm:$0x1] %vm372_vm8, %v363_v22 }
 0x12f PF: > { %s13_s14 = sadd.s32 1, %s567_s14   ;;  %s716_s12 = smov %s563_s13 }
 0x130   : > { %p10_p6 = scmp.ge.s32.totalorder %s13_s14, 4   ;;  %s717_s13 = smov %s719_s15 }
 0x132   :  { %12 = sbr.rel (!%p10_p6) target bundleno = 2 (0x2), region = 84 }

// kernel: esa_forward.7
= control target key start
LH: loop header
LB: loop body
LE: loop exit
PB: predicated region body
PF: predicated region fallthrough
CT: control target
= control target key end

     0   :  { %s2063_s0 = inlined_call_operand.vmem [shape: f32[2,16,24,24], index: 0, kind: input, shape index: {}]   ;;  %s2064_s1 = inlined_call_operand.vmem [shape: f32[2,8,2,2], index: 1, kind: input, shape index: {}]   ;;  %s2065_s2 = inlined_call_operand.vmem [shape: f32[24,2], index: 2, kind: input, shape index: {}]   ;;  %s2066_s3 = inlined_call_operand.vmem [shape: f32[2,24], index: 3, kind: input, shape index: {}]   ;;  %s2067_s4 = inlined_call_operand.vmem [shape: f32[16,8], index: 4, kind: input, shape index: {}]   ;;  %s2068_s5 = inlined_call_operand.vmem [shape: f32[16,16], index: 5, kind: input, shape index: {}]   ;;  %s2069_s6 = inlined_call_operand.vmem [shape: f32[16,1], index: 6, kind: input, shape index: {}]   ;;  %s2070_s7 = inlined_call_operand.hbm [shape: f32[2,16,24,24], index: 7, kind: output, shape index: {}]  }
   0x1   :  { %2072 = sst [smem:[#allocation6_spill]] %s2067_s4 }
   0x2   :  { %12 = vsyncpa [#allocation4], 0 }
   0x3   :  { %14 = vsyncpa [#allocation4 + $0x1], 0  ;;  %s1659_s24 = smov 0   ;;  %s1661_s25 = smov 0  }
   0x4   :  { %s1663_s26 = smov 0   ;;  %s1665_s27 = smov 0  }
   0x5   :  { %s1667_s28 = smov 0   ;;  %s1669_s29 = smov 0  }
   0x6 LB: > { %s1359_s30 = sadd.s32 4294967295, %s1610_s29   ;;  %s1360_s8 = sadd.s32 4294967294, %s1610_s29   ;;  %s1610_s29 = sphi %s1669_s29, %s20_s29   ;;  %s1606_s28 = sphi %s1667_s28, %s2081_s28   ;;  %s1602_s27 = sphi %s1665_s27, %s2080_s27   ;;  %s1598_s26 = sphi %s1663_s26, %s2079_s26   ;;  %s1594_s25 = sphi %s1661_s25, %s2078_s25   ;;  %s1590_s24 = sphi %s1659_s24, %s2077_s24  }
   0x7   : > { %s32_s9 = sadd.s32 1, %s1606_s28  ;;  %s205_s10 = sadd.s32 1, %s1598_s26 }
   0x8   : > { %p34_p0 = scmp.ge.s32.totalorder %s32_s9, 2  ;;  %p215_p1 = scmp.ne.s32.totalorder %s1598_s26, %s1594_s25 }
   0x9   : > { %p216_p2 = scmp.eq.s32.totalorder %s1359_s30, 1  ;;  %p221_p3 = scmp.ne.s32.totalorder %s1594_s25, %s1590_s24 }
   0xa   : > { %s2083_s9 = smov (%p34_p0, %s32_s9), 0  ;;  %p222_p5 = scmp.eq.s32.totalorder %s1360_s8, 1 }
   0xb   : > { %p1699_p4 = por %p216_p2, %p215_p1  ;;  %s200_s12 = ssub.s32 %s1606_s28, %s2083_s9 }
   0xc   : > { %p1364_p6 = scmp.ge.s32.totalorder %s1610_s29, 1  ;;  %p203_p7 = scmp.eq.s32.totalorder %s200_s12, 0 }
   0xd   : > { %p1706_p8 = por %p222_p5, %p221_p3  ;;  %p282_p9 = scmp.lt.s32.totalorder %s1610_s29, 3 }
   0xe   : > { %s1712_s14 = scalar_select %p203_p7, %s1598_s26, %s205_s10  }
   0xf   : > { %p283_p10 = pnand %p1364_p6, %p282_p9 }
  0x10   : > { %p329_p11 = scmp.lt.s32.totalorder (!%p283_p10), %s1602_s27, 1  ;;  %s2071_s15 = sand.u32 (!%p283_p10), 1, %s1594_s25  }
  0x11   : > { %286 = sbr.rel (%p283_p10) target bundleno = 590 (0x24e), region = 48  ;;  %s2075_s4 = sld [smem:[#allocation6_spill]] (!%p283_p10) }
  0x12   : > { %s1718_s16 = smul.u32 (!%p283_p10), 384, %s2071_s15  ;;  %s1860_s22 = smov (!%p283_p10), 0  }
  0x14   : > { %s327_s21 = scalar_lea.vmem (!%p283_p10), [#allocation3], %s1718_s16 }
  0x16   : > { %v1733_v2 = vld [vmem:[%s2068_s5] sm:$0xff]  ;;  %s330_s23 = scalar_select %p329_p11, %s1602_s27, 1  ;;  %v1739_v3 = vld [vmem:[%s2068_s5 + $0x8] sm:$0xff]  ;;  %vm372_vm0 = vcmask 1041408   ;;  %vm362_vm1 = vcmask 15360   ;;  %v353_v14 = vld [vmem:[%s2065_s2 + $0x10] sm:$0xff] }
  0x17   : > { %v1723_v0 = vld [vmem:[%s2075_s4] sm:$0xff]  ;;  %v1728_v1 = vld [vmem:[%s2075_s4 + $0x8] sm:$0xff]  ;;  %vm440_vm2 = vcmask 195584  }
  0x18   : > { %v1744_v4 = vld [vmem:[%s2069_s6] sm:$0xff]  ;;  %v1749_v5 = vld [vmem:[%s2069_s6 + $0x8] sm:$0xff]  ;;  %s1451_s19 = smul.u32 384, %s330_s23  ;;  %s1446_s20 = sshll.u32 %s330_s23, 4 }
  0x19   : > { %s342_s15 = scalar_lea.vmem %s2064_s1, %s1446_s20  ;;  %v351_v6 = vld [vmem:[%s2065_s2] sm:$0xff]  ;;  %v352_v13 = vld [vmem:[%s2065_s2 + $0x8] sm:$0xff] }
  0x1a   : > { %s1760_s4 = scalar_lea.vmem %s2063_s0, %s1451_s19  ;;  %v1376_v7 = vld [vmem:[%s342_s15 + $0x2] sm:$0x3]  ;;  %v1394_v8 = vld [vmem:[%s342_s15 + $0x6] sm:$0x3]  ;;  %v361_v9 = vld [vmem:[%s342_s15] sm:$0x3] }
  0x1b   : > { %1377 = vmatpush.msk.msra.mxu2 %vm372_vm0, %v1376_v7  ;;  %1368 = vmatpush.msk.msra.mxu0 %vm372_vm0, %v361_v9  ;;  %v1385_v10 = vld [vmem:[%s342_s15 + $0x4] sm:$0x3]  ;;  %v1412_v11 = vld [vmem:[%s342_s15 + $0xa] sm:$0x3]  ;;  %v1403_v12 = vld [vmem:[%s342_s15 + $0x8] sm:$0x3] }
  0x1c   : > { %1378 = vmatmul.msk.f32.vlgmr.msra.gmra.mxu2 %vm362_vm1, %v351_v6  ;;  %1369 = vmatmul.msk.f32.vlgmr.msra.gmra.mxu0 %vm362_vm1, %v351_v6  ;;  %v1430_v15 = vld [vmem:[%s342_s15 + $0xe] sm:$0x3]  ;;  %v1421_v16 = vld [vmem:[%s342_s15 + $0xc] sm:$0x3]  ;;  %v354_v17 = vld [vmem:[%s2066_s3] sm:$0x3] }
  0x1d   : > { %1395 = vmatpush.msk.msrb.mxu2 %vm372_vm0, %v1394_v8  ;;  %1386 = vmatpush.msk.msrb.mxu0 %vm372_vm0, %v1385_v10 }
  0x1e   : > { %1381 = vmatpush.msk.msra.mxu3 %vm372_vm0, %v354_v17  ;;  %1372 = vmatpush.msk.msra.mxu1 %vm372_vm0, %v354_v17 }
  0x1f   : > { %1413 = vmatpush.msk.msra.mxu2 %vm372_vm0, %v1412_v11  ;;  %1404 = vmatpush.msk.msra.mxu0 %vm372_vm0, %v1403_v12 }
  0x20   : > { %1399 = vmatpush.msk.msrb.mxu3 %vm372_vm0, %v354_v17  ;;  %1390 = vmatpush.msk.msrb.mxu1 %vm372_vm0, %v354_v17 }
  0x24   : > { %1379 = vmatmul.msk.f32.gmra.mxu2 %vm362_vm1, %v352_v13  ;;  %1370 = vmatmul.msk.f32.gmra.mxu0 %vm362_vm1, %v352_v13 }
  0x2c   : > { %1380 = vmatmul.msk.f32.gmra.mxu2 %vm362_vm1, %v353_v14  ;;  %1371 = vmatmul.msk.f32.gmra.mxu0 %vm362_vm1, %v353_v14 }
  0x34   : > { %1396 = vmatmul.msk.f32.vlgmr.msrb.gmra.mxu2 %vm362_vm1, %v351_v6  ;;  %1387 = vmatmul.msk.f32.vlgmr.msrb.gmra.mxu0 %vm362_vm1, %v351_v6 }
  0x35   : > { %1431 = vmatpush.msk.msrb.mxu2 %vm372_vm0, %v1430_v15  ;;  %1422 = vmatpush.msk.msrb.mxu0 %vm372_vm0, %v1421_v16 }
  0x3c   : > { %1397 = vmatmul.msk.f32.gmra.mxu2 %vm362_vm1, %v352_v13  ;;  %1388 = vmatmul.msk.f32.gmra.mxu0 %vm362_vm1, %v352_v13 }
  0x44   : > { %1398 = vmatmul.msk.f32.gmra.mxu2 %vm362_vm1, %v353_v14  ;;  %1389 = vmatmul.msk.f32.gmra.mxu0 %vm362_vm1, %v353_v14 }
  0x4c   : > { %1414 = vmatmul.msk.f32.vlgmr.msra.gmra.mxu2 %vm362_vm1, %v351_v6  ;;  %1405 = vmatmul.msk.f32.vlgmr.msra.gmra.mxu0 %vm362_vm1, %v351_v6 }
  0x54   : > { %1415 = vmatmul.msk.f32.gmra.mxu2 %vm362_vm1, %v352_v13  ;;  %1406 = vmatmul.msk.f32.gmra.mxu0 %vm362_vm1, %v352_v13 }
  0x5c   : > { %1416 = vmatmul.msk.f32.gmra.mxu2 %vm362_vm1, %v353_v14  ;;  %1407 = vmatmul.msk.f32.gmra.mxu0 %vm362_vm1, %v353_v14 }
  0x64   : > { %1432 = vmatmul.msk.f32.vlgmr.msrb.gmra.mxu2 %vm362_vm1, %v351_v6  ;;  %1423 = vmatmul.msk.f32.vlgmr.msrb.gmra.mxu0 %vm362_vm1, %v351_v6 }
  0x6c   : > { %1433 = vmatmul.msk.f32.gmra.mxu2 %vm362_vm1, %v352_v13  ;;  %1424 = vmatmul.msk.f32.gmra.mxu0 %vm362_vm1, %v352_v13 }
  0x74   : > { %1434 = vmatmul.msk.f32.gmra.mxu2 %vm362_vm1, %v353_v14  ;;  %1425 = vmatmul.msk.f32.gmra.mxu0 %vm362_vm1, %v353_v14 }
  0x99   : > { %v393_v18 = vpop.f32.mrf.mxu0 }
  0x9a   : > { %1373 = vmatmul.msk.f32.vlgmr.msra.gmra.mxu1 %vm362_vm1, %v393_v18 }
  0x9b   : > { %1408 = vmatpush.msk.msra.mxu1 %vm372_vm0, %v354_v17 }
  0x9f   : > { %v466_v19 = vpop.f32.mrf.mxu2 }
  0xa0   : > { %1382 = vmatmul.msk.f32.vlgmr.msra.gmra.mxu3 %vm362_vm1, %v466_v19 }
  0xa1   : > { %v396_v20 = vpop.f32.mrf.mxu0  ;;  %1417 = vmatpush.msk.msra.mxu3 %vm372_vm0, %v354_v17 }
  0xa2   : > { %1374 = vmatmul.msk.f32.gmra.mxu1 %vm362_vm1, %v396_v20 }
  0xa7   : > { %v469_v21 = vpop.f32.mrf.mxu2 }
  0xa8   : > { %1383 = vmatmul.msk.f32.gmra.mxu3 %vm362_vm1, %v469_v21 }
  0xa9   : > { %v399_v22 = vpop.f32.mrf.mxu0 }
  0xaa   : > { %1375 = vmatmul.msk.f32.gmra.mxu1 %vm362_vm1, %v399_v22 }
  0xaf   : > { %v472_v23 = vpop.f32.mrf.mxu2 }
  0xb0   : > { %1384 = vmatmul.msk.f32.gmra.mxu3 %vm362_vm1, %v472_v23 }
  0xb1   : > { %v536_v24 = vpop.f32.mrf.mxu0 }
  0xb2   : > { %1391 = vmatmul.msk.f32.vlgmr.msrb.gmra.mxu1 %vm362_vm1, %v536_v24 }
  0xb3   : > { %1426 = vmatpush.msk.msrb.mxu1 %vm372_vm0, %v354_v17 }
  0xb7   : > { %v606_v25 = vpop.f32.mrf.mxu2 }
  0xb8   : > { %1400 = vmatmul.msk.f32.vlgmr.msrb.gmra.mxu3 %vm362_vm1, %v606_v25 }
  0xb9   : > { %v539_v26 = vpop.f32.mrf.mxu0  ;;  %1435 = vmatpush.msk.msrb.mxu3 %vm372_vm0, %v354_v17 }
  0xba   : > { %1392 = vmatmul.msk.f32.gmra.mxu1 %vm362_vm1, %v539_v26 }
  0xbf   : > { %v609_v27 = vpop.f32.mrf.mxu2 }
  0xc0   : > { %1401 = vmatmul.msk.f32.gmra.mxu3 %vm362_vm1, %v609_v27 }
  0xc1   : > { %v542_v28 = vpop.f32.mrf.mxu0 }
  0xc2   : > { %1393 = vmatmul.msk.f32.gmra.mxu1 %vm362_vm1, %v542_v28 }
  0xc7   : > { %v612_v29 = vpop.f32.mrf.mxu2 }
  0xc8   : > { %1402 = vmatmul.msk.f32.gmra.mxu3 %vm362_vm1, %v612_v29 }
  0xc9   : > { %v676_v30 = vpop.f32.mrf.mxu0 }
  0xca   : > { %1409 = vmatmul.msk.f32.vlgmr.msra.gmra.mxu1 %vm362_vm1, %v676_v30 }
  0xcf   : > { %v746_v31 = vpop.f32.mrf.mxu2 }
  0xd0   : > { %1418 = vmatmul.msk.f32.vlgmr.msra.gmra.mxu3 %vm362_vm1, %v746_v31 }
  0xd1   : > { %v679_v32 = vpop.f32.mrf.mxu0 }
  0xd2   : > { %1410 = vmatmul.msk.f32.gmra.mxu1 %vm362_vm1, %v679_v32 }
  0xd7   : > { %v749_v33 = vpop.f32.mrf.mxu2 }
  0xd8   : > { %1419 = vmatmul.msk.f32.gmra.mxu3 %vm362_vm1, %v749_v33 }
  0xd9   : > { %v682_v34 = vpop.f32.mrf.mxu0 }
  0xda   : > { %1411 = vmatmul.msk.f32.gmra.mxu1 %vm362_vm1, %v682_v34 }
  0xdf   : > { %v752_v35 = vpop.f32.mrf.mxu2 }
  0xe0   : > { %1420 = vmatmul.msk.f32.gmra.mxu3 %vm362_vm1, %v752_v35 }
  0xe1   : > { %v816_v36 = vpop.f32.mrf.mxu0 }
  0xe2   : > { %1427 = vmatmul.msk.f32.vlgmr.msrb.gmra.mxu1 %vm362_vm1, %v816_v36 }
  0xe7   : > { %v886_v37 = vpop.f32.mrf.mxu2 }
  0xe8   : > { %1436 = vmatmul.msk.f32.vlgmr.msrb.gmra.mxu3 %vm362_vm1, %v886_v37 }
  0xe9   : > { %v819_v38 = vpop.f32.mrf.mxu0 }
  0xea   : > { %1428 = vmatmul.msk.f32.gmra.mxu1 %vm362_vm1, %v819_v38 }
  0xef   : > { %v889_v39 = vpop.f32.mrf.mxu2 }
  0xf0   : > { %1437 = vmatmul.msk.f32.gmra.mxu3 %vm362_vm1, %v889_v39 }
  0xf1   : > { %v822_v40 = vpop.f32.mrf.mxu0 }
  0xf2   : > { %1429 = vmatmul.msk.f32.gmra.mxu1 %vm362_vm1, %v822_v40 }
  0xf7   : > { %v892_v41 = vpop.f32.mrf.mxu2 }
  0xf8   : > { %1438 = vmatmul.msk.f32.gmra.mxu3 %vm362_vm1, %v892_v41 }
 0x117   : > { %v431_v42 = vpop.f32.mrf.mxu1 }
 0x118   : > { %441 = vst.msk [vmem:[#allocation2] sm:$0xff] %vm440_vm2, %v431_v42 }
 0x11f   : > { %v434_v43 = vpop.f32.mrf.mxu1 }
 0x120   : > { %442 = vst.msk [vmem:[#allocation2 + $0x8] sm:$0xff] %vm440_vm2, %v434_v43 }
 0x123   : > { %v501_v44 = vpop.f32.mrf.mxu3 }
 0x124   : > { %511 = vst.msk [vmem:[#allocation2 + $0x18] sm:$0xff] %vm440_vm2, %v501_v44 }
 0x127   : > { %v437_v45 = vpop.f32.mrf.mxu1 }
 0x128   : > { %443 = vst.msk [vmem:[#allocation2 + $0x10] sm:$0xff] %vm440_vm2, %v437_v45 }
 0x12b   : > { %v504_v46 = vpop.f32.mrf.mxu3 }
 0x12c   : > { %512 = vst.msk [vmem:[#allocation2 + $0x20] sm:$0xff] %vm440_vm2, %v504_v46 }
 0x12f   : > { %v571_v47 = vpop.f32.mrf.mxu1 }
 0x130   : > { %581 = vst.msk [vmem:[#allocation2 + $0x30] sm:$0xff] %vm440_vm2, %v571_v47 }
 0x133   : > { %v507_v48 = vpop.f32.mrf.mxu3 }
 0x134   : > { %513 = vst.msk [vmem:[#allocation2 + $0x28] sm:$0xff] %vm440_vm2, %v507_v48 }
 0x137   : > { %v574_v49 = vpop.f32.mrf.mxu1 }
 0x138   : > { %582 = vst.msk [vmem:[#allocation2 + $0x38] sm:$0xff] %vm440_vm2, %v574_v49 }
 0x13b   : > { %v641_v50 = vpop.f32.mrf.mxu3 }
 0x13c   : > { %651 = vst.msk [vmem:[#allocation2 + $0x48] sm:$0xff] %vm440_vm2, %v641_v50 }
 0x13f   : > { %v577_v51 = vpop.f32.mrf.mxu1 }
 0x140   : > { %583 = vst.msk [vmem:[#allocation2 + $0x40] sm:$0xff] %vm440_vm2, %v577_v51 }
 0x143   : > { %v644_v52 = vpop.f32.mrf.mxu3 }
 0x144   : > { %652 = vst.msk [vmem:[#allocation2 + $0x50] sm:$0xff] %vm440_vm2, %v644_v52 }
 0x147   : > { %v711_v53 = vpop.f32.mrf.mxu1 }
 0x148   : > { %721 = vst.msk [vmem:[#allocation2 + $0x60] sm:$0xff] %vm440_vm2, %v711_v53 }
 0x14b   : > { %v647_v54 = vpop.f32.mrf.mxu3 }
 0x14c   : > { %653 = vst.msk [vmem:[#allocation2 + $0x58] sm:$0xff] %vm440_vm2, %v647_v54 }
 0x14f   : > { %v714_v55 = vpop.f32.mrf.mxu1 }
 0x150   : > { %722 = vst.msk [vmem:[#allocation2 + $0x68] sm:$0xff] %vm440_vm2, %v714_v55 }
 0x153   : > { %v781_v56 = vpop.f32.mrf.mxu3 }
 0x154   : > { %791 = vst.msk [vmem:[#allocation2 + $0x78] sm:$0xff] %vm440_vm2, %v781_v56 }
 0x157   : > { %v717_v57 = vpop.f32.mrf.mxu1 }
 0x158   : > { %723 = vst.msk [vmem:[#allocation2 + $0x70] sm:$0xff] %vm440_vm2, %v717_v57 }
 0x15b   : > { %v784_v58 = vpop.f32.mrf.mxu3 }
 0x15c   : > { %792 = vst.msk [vmem:[#allocation2 + $0x80] sm:$0xff] %vm440_vm2, %v784_v58 }
 0x15f   : > { %v851_v59 = vpop.f32.mrf.mxu1 }
 0x160   : > { %861 = vst.msk [vmem:[#allocation2 + $0x90] sm:$0xff] %vm440_vm2, %v851_v59 }
 0x163   : > { %v787_v60 = vpop.f32.mrf.mxu3 }
 0x164   : > { %793 = vst.msk [vmem:[#allocation2 + $0x88] sm:$0xff] %vm440_vm2, %v787_v60 }
 0x167   : > { %v854_v61 = vpop.f32.mrf.mxu1 }
 0x168   : > { %862 = vst.msk [vmem:[#allocation2 + $0x98] sm:$0xff] %vm440_vm2, %v854_v61 }
 0x16b   : > { %v921_v62 = vpop.f32.mrf.mxu3 }
 0x16c   : > { %931 = vst.msk [vmem:[#allocation2 + $0xa8] sm:$0xff] %vm440_vm2, %v921_v62 }
 0x16f   : > { %v857_v63 = vpop.f32.mrf.mxu1 }
 0x170   : > { %863 = vst.msk [vmem:[#allocation2 + $0xa0] sm:$0xff] %vm440_vm2, %v857_v63 }
 0x173   : > { %v924_v6 = vpop.f32.mrf.mxu3 }
 0x174   : > { %932 = vst.msk [vmem:[#allocation2 + $0xb0] sm:$0xff] %vm440_vm2, %v924_v6 }
 0x17b   : > { %v927_v7 = vpop.f32.mrf.mxu3 }
 0x17c   : > { %933 = vst.msk [vmem:[#allocation2 + $0xb8] sm:$0xff] %vm440_vm2, %v927_v7 }
 0x17d LB: >> { %vm986_vm3 = vcmask 1041409   ;;  %vm989_vm4 = vcmask 1042434   ;;  %vm992_vm5 = vcmask 1043459   ;;  %vm995_vm6 = vcmask 1044484   ;;  %s1867_s30 = scalar_lea.vmem %s1760_s4, %s1614_s22  ;;  %s960_s8 = scalar_lea.vmem [#allocation2], %s1614_s22  ;;  %s1614_s22 = sphi %s1860_s22, %s940_s22  }
 0x17e   : >> { %vm998_vm7 = vcmask 1045509   ;;  %vm1001_vm8 = vcmask 1046534   ;;  %vm1004_vm9 = vcmask 1047559   ;;  %v1870_v8 = vld [vmem:[%s1867_s30 + $0xc0] sm:$0x1]  ;;  %v1616_v11 = vmov 0   ;;  %s1967_s10 = scalar_lea.vmem %s327_s21, %s1614_s22 [#allocation3] }
 0x17f   : >> { %v1873_v9 = vld [vmem:[%s1867_s30 + $0xd8] sm:$0x1]  ;;  %v1876_v10 = vld [vmem:[%s1867_s30 + $0xf0] sm:$0x1]  ;;  %1519 = vset.pattern.permute.xlu0 %v1616_v11  ;;  %v1879_v12 = vld [vmem:[%s1867_s30 + $0x108] sm:$0x1] }
 0x180   : >> { %v1882_v13 = vld [vmem:[%s1867_s30 + $0x120] sm:$0x1]  ;;  %v1885_v14 = vld [vmem:[%s1867_s30 + $0x138] sm:$0x1]  ;;  %1107 = vperm.xlu0 %1519, %v1744_v4   ;;  %v1889_v15 = vld [vmem:[%s1867_s30 + $0x150] sm:$0x1] }
 0x181   : >> { %v1892_v16 = vld [vmem:[%s1867_s30 + $0x168] sm:$0x1]  ;;  %v1006_v17 = vrot.slane %v1873_v9, 7  ;;  %v1008_v18 = vrot.slane %v1876_v10, 6  ;;  %v1010_v19 = vrot.slane %v1879_v12, 5  ;;  %v1012_v20 = vrot.slane %v1882_v13, 4 }
 0x182   : >> { %v1014_v21 = vrot.slane %v1885_v14, 3  ;;  %v1016_v22 = vrot.slane %v1889_v15, 2  ;;  %v1901_v23 = vld [vmem:[%s1867_s30] sm:$0x1]  ;;  %v1018_v25 = vrot.slane %v1892_v16, 1  ;;  %vm1022_vm10 = vcmask 130048  }
 0x183   : >> { %v1007_v24 = vsel %vm986_vm3, %v1006_v17, %v1870_v8  ;;  %v1907_v26 = vld [vmem:[%s1867_s30 + $0x18] sm:$0x1]  ;;  %v1910_v27 = vld [vmem:[%s1867_s30 + $0x30] sm:$0x1]  ;;  %v1914_v29 = vld [vmem:[%s1867_s30 + $0x48] sm:$0x1] }
 0x184   : >> { %v1009_v28 = vsel %vm989_vm4, %v1008_v18, %v1007_v24  ;;  %v1917_v30 = vld [vmem:[%s1867_s30 + $0x60] sm:$0x1]  ;;  %v1920_v31 = vld [vmem:[%s1867_s30 + $0x78] sm:$0x1]  ;;  %v1924_v33 = vld [vmem:[%s1867_s30 + $0x90] sm:$0x1] }
 0x185   : >> { %v1011_v32 = vsel %vm992_vm5, %v1010_v19, %v1009_v28  ;;  %v1927_v34 = vld [vmem:[%s1867_s30 + $0xa8] sm:$0x1]  ;;  %v985_v35 = vrot.slane %v1907_v26, 7  ;;  %v988_v36 = vrot.slane %v1910_v27, 6  ;;  %v991_v38 = vrot.slane %v1914_v29, 5  ;;  %s940_s22 = sadd.s32 1, %s1614_s22  }
 0x186   : >> { %v1013_v37 = vsel %vm995_vm6, %v1012_v20, %v1011_v32  ;;  %v994_v39 = vrot.slane %v1917_v30, 4  ;;  %v997_v40 = vrot.slane %v1920_v31, 3  ;;  %v961_v41 = vld [vmem:[%s960_s8] sm:$0x1]  ;;  %v1000_v44 = vrot.slane %v1924_v33, 2  ;;  %p939_p12 = scmp.ge.s32.totalorder %s940_s22, 24 }
 0x187   : >> { %v1015_v42 = vsel %vm998_vm7, %v1014_v21, %v1013_v37  ;;  %v987_v43 = vsel %vm986_vm3, %v985_v35, %v1901_v23  ;;  %v1003_v45 = vrot.slane %v1927_v34, 1  ;;  %v962_v46 = vld [vmem:[%s960_s8 + $0x18] sm:$0x1]  ;;  %v963_v47 = vld [vmem:[%s960_s8 + $0x30] sm:$0x1]  ;;  %vm1075_vm11 = vcmask 64512  }
 0x188   : >> { %v1017_v48 = vsel %vm1001_vm8, %v1016_v22, %v1015_v42  ;;  %v990_v49 = vsel %vm989_vm4, %v988_v36, %v987_v43  ;;  %v964_v50 = vld [vmem:[%s960_s8 + $0x48] sm:$0x1]  ;;  %v965_v51 = vld [vmem:[%s960_s8 + $0x60] sm:$0x1]  ;;  %v966_v52 = vld [vmem:[%s960_s8 + $0x78] sm:$0x1]  ;;  %1112 = vperm.xlu0 %1519, %v1749_v5  }
 0x189   : >> { %v1019_v53 = vsel %vm1004_vm9, %v1018_v25, %v1017_v48  ;;  %v993_v54 = vsel %vm992_vm5, %v991_v38, %v990_v49  ;;  %v967_v55 = vld [vmem:[%s960_s8 + $0x90] sm:$0x1]  ;;  %v1060_v56 = vrot.slane %v962_v46, 7  ;;  %v1062_v57 = vrot.slane %v963_v47, 6  ;;  %v968_v59 = vld [vmem:[%s960_s8 + $0xa8] sm:$0x1] }
 0x18a   : >> { %1043 = vmatpush.msra.mxu0 %v1019_v53  ;;  %1447 = vmatpush.msra.mxu2 %v1019_v53  ;;  %v996_v58 = vsel %vm995_vm6, %v994_v39, %v993_v54  ;;  %v1064_v60 = vrot.slane %v964_v50, 5  ;;  %v1066_v61 = vrot.slane %v965_v51, 4  ;;  %v1068_v6 = vrot.slane %v966_v52, 3  ;;  %s1452_s12 = smul.u32 (%p939_p12), 384, %s1602_s27  ;;  %s1242_s23 = sshll.u32 (%p939_p12), %s327_s21, 4  ;;  %s1243_s23 = int_to_ptr.vmem [resolvable:$true] %s1242_s23 }
 0x18b   : >> { %v999_v62 = vsel %vm998_vm7, %v997_v40, %v996_v58  ;;  %v1061_v63 = vsel %vm986_vm3, %v1060_v56, %v961_v41  ;;  %v1070_v17 = vrot.slane %v967_v55, 2  ;;  %v1072_v20 = vrot.slane %v968_v59, 1  ;;  %s2076_s20 = sand.u32 (%p939_p12), 1, %s1594_s25   ;;  %s1548_s16 = scalar_lea.hbm (%p939_p12), %s2070_s7, 768 }
 0x18c   : >> { %v1002_v7 = vsel %vm1001_vm8, %v1000_v44, %v999_v62  ;;  %v1063_v11 = vsel %vm989_vm4, %v1062_v57, %v1061_v63  ;;  %vm1210_vm1 = vcmask 188416   ;;  %s1241_s19 = scalar_lea.hbm (%p939_p12), %s2070_s7, %s1452_s12  ;;  %s1228_s30 = scalar_lea.sflag (%p939_p12), [#allocation4], %s2076_s20 }
 0x18d   : >> { %v1005_v18 = vsel %vm1004_vm9, %v1003_v45, %v1002_v7  ;;  %v1065_v19 = vsel %vm992_vm5, %v1064_v60, %v1063_v11  ;;  %s1244_s15 = sshll.u32 (%p939_p12), %s1241_s19, 4  ;;  %s1245_s15 = int_to_ptr.hbm [resolvable:$true] %s1244_s15 }
 0x18e   : >> { %1044 = vmatpush.msra.mxu0 %v1005_v18  ;;  %1448 = vmatpush.msra.mxu2 %v1005_v18  ;;  %v1067_v21 = vsel %vm995_vm6, %v1066_v61, %v1065_v19  ;;  %s1542_s8 = sshra.s32 (%p939_p12), %s1245_s15, 4  ;;  %s1543_s8 = int_to_ptr.hbm [resolvable:$true] %s1542_s8 }
 0x18f   : >> { %v1069_v22 = vsel %vm998_vm7, %v1068_v6, %v1067_v21  ;;  %1439 = vmatmul.msk.f32.vlgmr.msra.gmra.mxu0 %vm1022_vm10, %v1733_v2  ;;  %1440 = vmatmul.msk.f32.vlgmr.msra.gmra.mxu2 %vm1022_vm10, %v1739_v3  ;;  %s1544_s22 = scalar_lea.hbm (%p939_p12), %s1543_s8, 384  ;;  %p1549_p2 = scmp.lt.s32.totalorder (%p939_p12), %s1543_s8, %s2070_s7 }
 0x190   : >> { %v1071_v24 = vsel %vm1001_vm8, %v1070_v17, %v1069_v22  ;;  %p1545_p13 = scmp.ne.s32.totalorder (%p939_p12), %s1543_s8, %s1544_s22  ;;  %p1550_p3 = scmp.lt.s32.totalorder (%p939_p12), %s1548_s16, %s1544_s22 }
 0x191   : >> { %v1073_v25 = vsel %vm1004_vm9, %v1072_v20, %v1071_v24 }
 0x192   : >> { %1097 = vmatpush.msra.mxu1 %v1073_v25  ;;  %1449 = vmatpush.msra.mxu3 %v1073_v25  ;;  %p1546_p0 = pnand (%p939_p12), %p1545_p13, %p1699_p4  ;;  %p1551_p5 = por (%p939_p12), %p1550_p3, %p1549_p2 }
 0x193   : >> { %1441 = vmatmul.msk.f32.vlgmr.msra.gmra.mxu1 %vm1075_vm11, %v1723_v0  ;;  %1442 = vmatmul.msk.f32.vlgmr.msra.gmra.mxu3 %vm1075_vm11, %v1728_v1 }
 0x194   : > { %p1547_p1 = pneg (%p939_p12), %p1546_p0 }
 0x196   : > { %p1552_p6 = pnand (%p939_p12), %p1551_p5, %p1547_p1 }
 0x1f2   : >> { %v1108_v28 = vpop.permute.xlu0 %1107 }
 0x1fa   : >> { %v1113_v43 = vpop.permute.xlu0 %1112 }
 0x20c   : >> { %v1046_v32 = vpop.f32.mrf.mxu0 }
 0x210   : >> { %v1099_v35 = vpop.f32.mrf.mxu1 }
 0x211   : >> { %v1100_v36 = vadd.f32 %v1099_v35, %v1046_v32 }
 0x212   : >> { %v1049_v38 = vpop.f32.mrf.mxu2 }
 0x213   : >> { %v1115_v37 = vadd.f32 %v1108_v28, %v1100_v36 }
 0x215   : >> { %v1117_v39 = vand.u32 2147483647, %v1115_v37  ;;  %vm1155_vm0 = vcmp.ge.f32.partialorder %v1115_v37, 0.0 }
 0x216   : >> { %v1102_v40 = vpop.f32.mrf.mxu3 }
 0x217   : >> { %v1119_v41 = vsub.f32 0.0, %v1117_v39  ;;  %v1103_v42 = vadd.f32 %v1102_v40, %v1049_v38 }
 0x219   : >> { %v1121_v44 = vmul.f32 1.442695, %v1119_v41  ;;  %v1961_v45 = vadd.f32 %v1113_v43, %v1103_v42 }
 0x21b   : >> { %1520 = vpow2.f32 %v1121_v44  ;;  %v1118_v46 = vand.u32 2147483647, %v1961_v45  ;;  %vm1156_vm6 = vcmp.ge.f32.partialorder %v1961_v45, 0.0 }
 0x21d   : >> { %v1120_v47 = vsub.f32 0.0, %v1118_v46 }
 0x21f   : >> { %v1123_v48 = vmul.f32 1.442695, %v1120_v47 }
 0x221   : >> { %v1521_v49 = vpop.eup %1520  ;;  %1522 = vpow2.f32 %v1123_v48 }
 0x222   : >> { %v1125_v50 = vadd.f32 1.0, %v1521_v49 }
 0x224   : >> { %1524 = vrcp.f32 %v1125_v50  ;;  %v1138_v56 = vand.u32 2147483648, %v1125_v50  ;;  %v1136_v58 = vand.u32 2147483647, %v1125_v50  ;;  %vm1132_vm13 = vweird.f32 %v1125_v50 }
 0x226   : >> { %v1139_v62 = vor.u32 1.1754944e-38, %v1138_v56  ;;  %vm1137_vm15 = vcmp.eq.f32.partialorder %v1136_v58, 8.507059e+37 }
 0x227   : >> { %v1523_v51 = vpop.eup %1522 }
 0x228   : >> { %v1126_v52 = vadd.f32 1.0, %v1523_v51 }
 0x22a   : >> { %v1525_v53 = vpop.eup %1524  ;;  %1526 = vrcp.f32 %v1126_v52  ;;  %v1152_v18 = vand.u32 2147483648, %v1126_v52  ;;  %vm1146_vm2 = vweird.f32 %v1126_v52  ;;  %v1150_v21 = vand.u32 2147483647, %v1126_v52 }
 0x22b   : >> { %v1128_v54 = vmul.f32 %v1525_v53, %v1125_v50  ;;  %vm1133_vm12 = vweird.f32 %v1525_v53 }
 0x22c   : >> { %vm1134_vm14 = vmor %vm1132_vm13, %vm1133_vm12  ;;  %v1153_v37 = vor.u32 1.1754944e-38, %v1152_v18  ;;  %vm1151_vm5 = vcmp.eq.f32.partialorder %v1150_v21, 8.507059e+37 }
 0x22d   : >> { %v1129_v55 = vsub.f32 1.0, %v1128_v54 }
 0x22f   : >> { %v1130_v57 = vmul.f32 %v1525_v53, %v1129_v55 }
 0x230   : >> { %v1527_v59 = vpop.eup %1526 }
 0x231   : >> { %v1131_v60 = vadd.f32 %v1525_v53, %v1130_v57  ;;  %v1142_v61 = vmul.f32 %v1527_v59, %v1126_v52  ;;  %vm1147_vm3 = vweird.f32 %v1527_v59 }
 0x232   : >> { %vm1148_vm4 = vmor %vm1146_vm2, %vm1147_vm3 }
 0x233   : >> { %v1135_v63 = vsel %vm1134_vm14, %v1525_v53, %v1131_v60  ;;  %v1143_v6 = vsub.f32 1.0, %v1142_v61 }
 0x234   : >> { %v1140_v7 = vsel %vm1137_vm15, %v1139_v62, %v1135_v63 }
 0x235   : >> { %v1157_v11 = vmul.f32 %v1521_v49, %v1140_v7  ;;  %v1144_v17 = vmul.f32 %v1527_v59, %v1143_v6 }
 0x237   : >> { %v1159_v19 = vsel %vm1155_vm0, %v1140_v7, %v1157_v11  ;;  %v1145_v20 = vadd.f32 %v1527_v59, %v1144_v17 }
 0x238   : >> { %v1163_v22 = vrot.slane %v1159_v19, 1  ;;  %v1164_v24 = vrot.slane %v1159_v19, 2  ;;  %v1165_v25 = vrot.slane %v1159_v19, 3  ;;  %v1166_v28 = vrot.slane %v1159_v19, 4 }
 0x239   : >> { %v1167_v32 = vrot.slane %v1159_v19, 5  ;;  %v1168_v35 = vrot.slane %v1159_v19, 6  ;;  %v1193_v36 = vmul.f32 %v1159_v19, %v1901_v23  ;;  %v1169_v38 = vrot.slane %v1159_v19, 7 }
 0x23a   : >> { %v1194_v39 = vmul.f32 %v1163_v22, %v1907_v26  ;;  %v1195_v40 = vmul.f32 %v1164_v24, %v1910_v27  ;;  %v1196_v41 = vmul.f32 %v1165_v25, %v1914_v29  ;;  %v1197_v42 = vmul.f32 %v1166_v28, %v1917_v30 }
 0x23b   : >> { %1211 = vst.msk [vmem:[%s1967_s10] sm:$0x1] %vm1210_vm1, %v1193_v36  ;;  %v1149_v43 = vsel %vm1148_vm4, %v1527_v59, %v1145_v20  ;;  %v1198_v23 = vmul.f32 %v1167_v32, %v1920_v31  ;;  %v1199_v27 = vmul.f32 %v1168_v35, %v1924_v33  ;;  %v1200_v44 = vmul.f32 %v1169_v38, %v1927_v34 }
 0x23c   : >> { %1212 = vst.msk [vmem:[%s1967_s10 + $0x18] sm:$0x1] %vm1210_vm1, %v1194_v39  ;;  %v1154_v26 = vsel %vm1151_vm5, %v1153_v37, %v1149_v43 }
 0x23d   : >> { %1213 = vst.msk [vmem:[%s1967_s10 + $0x30] sm:$0x1] %vm1210_vm1, %v1195_v40  ;;  %v1158_v29 = vmul.f32 %v1523_v51, %v1154_v26 }
 0x23e   : >> { %1214 = vst.msk [vmem:[%s1967_s10 + $0x48] sm:$0x1] %vm1210_vm1, %v1196_v41 }
 0x23f   : >> { %1215 = vst.msk [vmem:[%s1967_s10 + $0x60] sm:$0x1] %vm1210_vm1, %v1197_v42  ;;  %v1160_v30 = vsel %vm1156_vm6, %v1154_v26, %v1158_v29 }
 0x240   : >> { %1216 = vst.msk [vmem:[%s1967_s10 + $0x78] sm:$0x1] %vm1210_vm1, %v1198_v23  ;;  %v1170_v31 = vrot.slane %v1160_v30, 1  ;;  %v1171_v46 = vrot.slane %v1160_v30, 2  ;;  %v1172_v33 = vrot.slane %v1160_v30, 3  ;;  %v1173_v47 = vrot.slane %v1160_v30, 4 }
 0x241   : >> { %1217 = vst.msk [vmem:[%s1967_s10 + $0x90] sm:$0x1] %vm1210_vm1, %v1199_v27  ;;  %v1174_v34 = vrot.slane %v1160_v30, 5  ;;  %v1175_v48 = vrot.slane %v1160_v30, 6  ;;  %v1201_v45 = vmul.f32 %v1160_v30, %v1870_v8  ;;  %v1176_v49 = vrot.slane %v1160_v30, 7 }
 0x242   : >> { %1218 = vst.msk [vmem:[%s1967_s10 + $0xa8] sm:$0x1] %vm1210_vm1, %v1200_v44  ;;  %v1202_v50 = vmul.f32 %v1170_v31, %v1873_v9  ;;  %v1203_v51 = vmul.f32 %v1171_v46, %v1876_v10  ;;  %v1204_v52 = vmul.f32 %v1172_v33, %v1879_v12  ;;  %v1205_v53 = vmul.f32 %v1173_v47, %v1882_v13 }
 0x243   : >> { %1219 = vst.msk [vmem:[%s1967_s10 + $0xc0] sm:$0x1] %vm1210_vm1, %v1201_v45  ;;  %v1206_v54 = vmul.f32 %v1174_v34, %v1885_v14  ;;  %v1207_v8 = vmul.f32 %v1175_v48, %v1889_v15  ;;  %v1208_v55 = vmul.f32 %v1176_v49, %v1892_v16 }
 0x244   : >> { %1220 = vst.msk [vmem:[%s1967_s10 + $0xd8] sm:$0x1] %vm1210_vm1, %v1202_v50 }
 0x245   : >> { %1221 = vst.msk [vmem:[%s1967_s10 + $0xf0] sm:$0x1] %vm1210_vm1, %v1203_v51 }
 0x246   : >> { %1222 = vst.msk [vmem:[%s1967_s10 + $0x108] sm:$0x1] %vm1210_vm1, %v1204_v52  ;;  %942 = sbr.rel (!%p939_p12) target bundleno = 381 (0x17d), region = 113 }
 0x247   : >> { %1223 = vst.msk [vmem:[%s1967_s10 + $0x120] sm:$0x1] %vm1210_vm1, %v1205_v53 }
 0x248   : >> { %1224 = vst.msk [vmem:[%s1967_s10 + $0x138] sm:$0x1] %vm1210_vm1, %v1206_v54 }
 0x249   : >> { %1225 = vst.msk [vmem:[%s1967_s10 + $0x150] sm:$0x1] %vm1210_vm1, %v1207_v8 }
 0x24a   : >> { %1226 = vst.msk [vmem:[%s1967_s10 + $0x168] sm:$0x1] %vm1210_vm1, %v1208_v55 }
 0x24b   : > { %1555 = shalt.err (!%p1552_p6)
}
 0x24c   : > { %s1617_s12 = smov 128   ;;  %s1618_s17 = smov 8  }
 0x24d   : > { %1453 = dma.vmem_to_hbm [thread:$0]  (%p1699_p4), %s1243_s23, 6144, %s1245_s15, %s1228_s30, %s1617_s12, %s1617_s12, %s1618_s17  }
 0x24e PF: > { %p1459_p7 = scmp.ge.s32.totalorder %s1610_s29, 2  ;;  %s1259_s18 = sand.u32 1, %s1590_s24  }
 0x24f   : > { %s1260_s19 = scalar_lea.sflag [#allocation4], %s1259_s18 }
 0x250   : > { %p1456_p9 = pnand %p1459_p7, %p1706_p8 }
 0x252   : > { %p1457_p10 = pneg %p1456_p9 }
 0x254   : > { %1585 = dma.done.wait (%p1457_p10), %s1260_s19, 6144  }
 0x255   : > { %1587 = vsyncadd (%p1457_p10), %s1260_s19, 4294961152  ;;  %s20_s29 = sadd.s32 1, %s1610_s29   ;;  %s2077_s24 = smov %s1594_s25 }
 0x256   : > { %p17_p11 = scmp.ge.s32.totalorder %s20_s29, 4   ;;  %s2078_s25 = smov %s1598_s26 }
 0x257   : > { %s2079_s26 = smov %s1712_s14  ;;  %s2080_s27 = smov %s1606_s28 }
 0x258   : > { %s2081_s28 = smov %s2083_s9  ;;  %19 = sbr.rel (!%p17_p11) target bundleno = 6 (0x6), region = 124 }
 0x25d   :  { %1266 = vsyncpa [#allocation4], 1 }
 0x25e   :  { %1268 = vsyncpa [#allocation4 + $0x1], 1 }

</bundles_post_ra>
